<compile_context>
chip_gen: v7x
topology: tpu7x:2x2x1
jax: 0.10.0
libtpu: 0.0.40
codegen_flags: <defaults>
</compile_context>

<pallas_src>
import functools

import jax
import jax.numpy as jnp
from jax.experimental import pallas as pl
from jax.experimental.pallas import tpu as pltpu

_LANE = 128       # TPU lane width: last-dim tiles must be 128-aligned
_T_BLK_CAP = 32   # max time steps per grid iteration (amortizes ~0.35us/grid-step overhead)
_UNROLL = 8       # partial unroll of the per-block recurrence loop (review: sweep 4/8/16)


def _round_up(x, m):
    return ((x + m - 1) // m) * m


def _largest_divisor_leq(n, cap):
    cap = max(1, min(cap, n))
    for d in range(cap, 0, -1):
        if n % d == 0:
            return d
    return 1


# ------------------------------ hardware introspection --------------------------------
def _device_kind():
    try:
        return jax.devices()[0].device_kind.lower()
    except Exception:
        return ""


@functools.lru_cache(maxsize=None)
def _vmem_capacity_bytes():
    try:
        cap = getattr(pltpu.get_tpu_info(), "vmem_capacity_bytes", None)
        if cap:
            return int(cap)
    except Exception:
        pass
    kind = _device_kind()
    if "v5" in kind or "v6" in kind:
        return 128 * 2**20
    return 64 * 2**20          # conservative default = v7x per-TensorCore VMEM


@functools.lru_cache(maxsize=None)
def _num_parallel_cores():
    # v7x exposes 2 TensorCores per chip; "parallel" grid axes shard across them.
    return 2 if "7" in _device_kind() else 1


@functools.lru_cache(maxsize=None)
def _buffered_specs_supported():
    """Probe once whether pipeline_mode=pl.Buffered(1) is accepted by this Pallas build."""
    if not hasattr(pl, "Buffered"):
        return False

    def _copy(x_ref, o_ref):
        o_ref[...] = x_ref[...]

    try:
        fn = pl.pallas_call(
            _copy,
            out_shape=jax.ShapeDtypeStruct((8, _LANE), jnp.float32),
            grid_spec=pltpu.PrefetchScalarGridSpec(
                num_scalar_prefetch=0,
                grid=(1,),
                in_specs=[pl.BlockSpec((8, _LANE), lambda i: (0, 0),
                                       pipeline_mode=pl.Buffered(1))],
                out_specs=pl.BlockSpec((8, _LANE), lambda i: (0, 0)),
            ),
        )
        jax.block_until_ready(fn(jnp.zeros((8, _LANE), jnp.float32)))
        return True
    except Exception:           # older Pallas: fall back to default double-buffering
        return False


def _const_spec(shape):
    """Spec for a block whose index never changes (weights / biases).  It is revisited on
    every grid step, so single-buffer it when supported to halve its VMEM footprint."""
    if _buffered_specs_supported():
        return pl.BlockSpec(shape, lambda b, t: (0, 0), pipeline_mode=pl.Buffered(1))
    return pl.BlockSpec(shape, lambda b, t: (0, 0))


# ------------------------------------ tile sizing --------------------------------------
def _choose_b_blk(Bp, b_mult, n_cores):
    cap = 128 if "v5" in _device_kind() else 256     # MXU rows: 128 on v5e, 256 on v6e/v7x
    n_tiles = max((Bp + cap - 1) // cap,
                  n_cores if Bp >= n_cores * b_mult else 1)
    b_blk = _round_up((Bp + n_tiles - 1) // n_tiles, b_mult)
    return max(b_mult, min(b_blk, Bp))


def _choose_t_blk(T, b_blk, d_in, Hp, Cp, bytes_act, budget):
    # Streamed per time step: x block + hidden-seq output block, both double-buffered.
    per_t = b_blk * (d_in + Hp) * bytes_act * 2
    # Resident: weights (counted double-buffered to stay safe even without Buffered(1)),
    # bias, f32 h/c scratch, plus the FC epilogue operands/output for the last layer.
    fixed = (d_in + Hp) * 4 * Hp * bytes_act * 2 + 4 * Hp * 4 + 2 * b_blk * Hp * 4
    if Cp:
        fixed += Hp * Cp * bytes_act * 2 + Cp * 4 + 2 * b_blk * Cp * 4
    avail = max(budget - fixed, per_t)
    return _largest_divisor_leq(T, min(_T_BLK_CAP, avail // per_t))


# ------------------------------- recurrent LSTM kernels --------------------------------
def _recurrence(x_ref, wih_ref, b_ref, whh_ref, out_ref, h_ref, c_ref, *,
                hidden, t_blk, unroll):
    """Run t_blk fused (input-projection + recurrence) LSTM steps.  h/c persist in f32
    VMEM scratch across the serial time-block grid axis.  Writes the hidden sequence iff
    out_ref is not None.  Returns the final h."""
    tb = pl.program_id(1)  # time-block index (serial / "arbitrary")

    @pl.when(tb == 0)
    def _():
        h_ref[...] = jnp.zeros_like(h_ref)
        c_ref[...] = jnp.zeros_like(c_ref)

    H = hidden
    w_ih = wih_ref[...]   # hoisted out of the unrolled loop
    w_hh = whh_ref[...]
    bias = b_ref[...]

    def step(i, carry):
        h, c = carry
        # Fused input projection + recurrent matmul: gates never round-trip through HBM.
        # The x @ W_ih matmul has no dependence on h, so it stays off the critical path.
        gates = (jnp.dot(x_ref[i], w_ih, preferred_element_type=jnp.float32)
                 + bias
                 + jnp.dot(h.astype(w_hh.dtype), w_hh,
                           preferred_element_type=jnp.float32))
        i_g = jax.nn.sigmoid(gates[:, 0 * H:1 * H])
        f_g = jax.nn.sigmoid(gates[:, 1 * H:2 * H])
        g_g = jnp.tanh(gates[:, 2 * H:3 * H])
        o_g = jax.nn.sigmoid(gates[:, 3 * H:4 * H])
        c_new = f_g * c + i_g * g_g
        h_new = o_g * jnp.tanh(c_new)
        if out_ref is not None:
            out_ref[i] = h_new.astype(out_ref.dtype)
        return (h_new, c_new)

    h, c = jax.lax.fori_loop(0, t_blk, step, (h_ref[...], c_ref[...]), unroll=unroll)
    h_ref[...] = h
    c_ref[...] = c
    return h


def _lstm_seq_kernel(x_ref, wih_ref, b_ref, whh_ref, out_ref, h_ref, c_ref, *,
                     hidden, t_blk, unroll):
    _recurrence(x_ref, wih_ref, b_ref, whh_ref, out_ref, h_ref, c_ref,
                hidden=hidden, t_blk=t_blk, unroll=unroll)


def _lstm_last_fc_kernel(x_ref, wih_ref, b_ref, whh_ref, wfc_ref, bfc_ref, out_ref,
                         h_ref, c_ref, *, hidden, t_blk, unroll):
    h = _recurrence(x_ref, wih_ref, b_ref, whh_ref, None, h_ref, c_ref,
                    hidden=hidden, t_blk=t_blk, unroll=unroll)

    # Fused FC + softmax epilogue; emitted only after the last time block.
    @pl.when(pl.program_id(1) == pl.num_programs(1) - 1)
    def _():
        logits = (jnp.dot(h.astype(wfc_ref.dtype), wfc_ref[...],
                          preferred_element_type=jnp.float32) + bfc_ref[...])
        m = jnp.max(logits, axis=-1, keepdims=True)
        e = jnp.exp(logits - m)
        out_ref[...] = e * pl.reciprocal(jnp.sum(e, axis=-1, keepdims=True), approx=True)


def lstm_layer_seq(x_seq, w_ih_t, b, w_hh_t, *, t_blk, b_blk, out_dtype, vmem_limit):
    """Non-final layer: fused projection + recurrence, emits the hidden sequence."""
    T, Bp, D = x_seq.shape
    Hp, H4 = w_hh_t.shape
    grid = (Bp // b_blk, T // t_blk)
    kernel = functools.partial(_lstm_seq_kernel, hidden=Hp, t_blk=t_blk,
                               unroll=min(_UNROLL, t_blk))
    return pl.pallas_call(
        kernel,
        out_shape=jax.ShapeDtypeStruct((T, Bp, Hp), out_dtype),
        grid_spec=pltpu.PrefetchScalarGridSpec(
            num_scalar_prefetch=0,
            grid=grid,
            in_specs=[pl.BlockSpec((t_blk, b_blk, D), lambda bt, tt: (tt, bt, 0)),
                      _const_spec((D, H4)),
                      _const_spec((1, H4)),
                      _const_spec((Hp, H4))],
            out_specs=pl.BlockSpec((t_blk, b_blk, Hp), lambda bt, tt: (tt, bt, 0)),
            scratch_shapes=[pltpu.VMEM((b_blk, Hp), jnp.float32),   # h state
                            pltpu.VMEM((b_blk, Hp), jnp.float32)],  # c state
        ),
        compiler_params=pltpu.CompilerParams(
            dimension_semantics=("parallel", "arbitrary"),
            vmem_limit_bytes=int(vmem_limit)),
    )(x_seq, w_ih_t, b, w_hh_t)


def lstm_layer_last_fc_softmax(x_seq, w_ih_t, b, w_hh_t, w_fc_pad, b_fc_pad, *,
                               t_blk, b_blk, vmem_limit):
    """Final layer: fused projection + recurrence + FC + softmax.  Returns (Bp, Cp) f32."""
    T, Bp, D = x_seq.shape
    Hp, H4 = w_hh_t.shape
    Cp = w_fc_pad.shape[1]
    grid = (Bp // b_blk, T // t_blk)
    kernel = functools.partial(_lstm_last_fc_kernel, hidden=Hp, t_blk=t_blk,
                               unroll=min(_UNROLL, t_blk))
    return pl.pallas_call(
        kernel,
        out_shape=jax.ShapeDtypeStruct((Bp, Cp), jnp.float32),
        grid_spec=pltpu.PrefetchScalarGridSpec(
            num_scalar_prefetch=0,
            grid=grid,
            in_specs=[pl.BlockSpec((t_blk, b_blk, D), lambda bt, tt: (tt, bt, 0)),
                      _const_spec((D, H4)),
                      _const_spec((1, H4)),
                      _const_spec((Hp, H4)),
                      _const_spec((Hp, Cp)),
                      _const_spec((1, Cp))],
            out_specs=pl.BlockSpec((b_blk, Cp), lambda bt, tt: (bt, 0)),
            scratch_shapes=[pltpu.VMEM((b_blk, Hp), jnp.float32),
                            pltpu.VMEM((b_blk, Hp), jnp.float32)],
        ),
        compiler_params=pltpu.CompilerParams(
            dimension_semantics=("parallel", "arbitrary"),
            vmem_limit_bytes=int(vmem_limit)),
    )(x_seq, w_ih_t, b, w_hh_t, w_fc_pad, b_fc_pad)


# -------------------------------------- module ----------------------------------------
def init_params(key, input_size, hidden_size, num_layers, num_classes):
    """Weights pre-transposed, biases pre-summed, and all kernel-side layouts padded
    lane-dense once: each gate occupies a 128-aligned Hp-wide slab (padded rows/lanes are
    zero, so padded h/c state stays exactly 0)."""
    H = hidden_size
    Hp = _round_up(H, _LANE)
    scale = float(H) ** -0.5
    params = {"layers": [], "num_classes": num_classes,
              "hidden_size": H, "hidden_pad": Hp}
    for layer in range(num_layers):
        d_in = input_size if layer == 0 else H
        d_in_pad = input_size if layer == 0 else Hp
        key, k1, k2, k3, k4 = jax.random.split(key, 5)
        w_ih = jax.random.uniform(k1, (4 * H, d_in), jnp.float32, -scale, scale)
        w_hh = jax.random.uniform(k2, (4 * H, H), jnp.float32, -scale, scale)
        b_ih = jax.random.uniform(k3, (4 * H,), jnp.float32, -scale, scale)
        b_hh = jax.random.uniform(k4, (4 * H,), jnp.float32, -scale, scale)
        b = b_ih + b_hh
        w_ih_t_pad = jnp.zeros((d_in_pad, 4 * Hp), jnp.float32)
        w_hh_t_pad = jnp.zeros((Hp, 4 * Hp), jnp.float32)
        b_pad = jnp.zeros((1, 4 * Hp), jnp.float32)
        for g in range(4):                       # gate order i, f, g, o
            w_ih_t_pad = w_ih_t_pad.at[:d_in, g * Hp:g * Hp + H].set(w_ih.T[:, g * H:(g + 1) * H])
            w_hh_t_pad = w_hh_t_pad.at[:H, g * Hp:g * Hp + H].set(w_hh.T[:, g * H:(g + 1) * H])
            b_pad = b_pad.at[0, g * Hp:g * Hp + H].set(b[g * H:(g + 1) * H])
        params["layers"].append({
            "w_ih_t": w_ih.T, "w_hh_t": w_hh.T, "b": b[None, :],          # reference layout
            "w_ih_t_pad": w_ih_t_pad, "w_hh_t_pad": w_hh_t_pad, "b_pad": b_pad,
        })
    key, k1, k2 = jax.random.split(key, 3)
    fc_w = jax.random.uniform(k1, (num_classes, H), jnp.float32, -scale, scale)
    fc_b = jax.random.uniform(k2, (num_classes,), jnp.float32, -scale, scale)
    params["fc_w_t"] = fc_w.T
    params["fc_b"] = fc_b
    Cp = _round_up(num_classes, _LANE)           # lane-dense class dim; padded logits -1e30
    params["fc_w_t_pad"] = jnp.zeros((Hp, Cp), jnp.float32).at[:H, :num_classes].set(fc_w.T)
    params["fc_b_pad"] = jnp.full((1, Cp), -1e30, jnp.float32).at[0, :num_classes].set(fc_b)
    return params


def lstm_forward(params, x, *, compute_dtype=jnp.bfloat16):
    """x: (B, T, input_size) batch-first, like the PyTorch module.  Returns (B, C) probs."""
    B, T, _ = x.shape
    C = params["num_classes"]
    Hp = params["hidden_pad"]
    Cp = params["fc_w_t_pad"].shape[1]

    bytes_act = jnp.dtype(compute_dtype).itemsize
    b_mult = 16 if bytes_act == 2 else 8          # bf16 vregs pack 16 sublanes
    n_cores = _num_parallel_cores()
    vmem_cap = _vmem_capacity_bytes()
    vmem_limit = max(32 * 2**20, min(vmem_cap - vmem_cap // 8, 112 * 2**20))
    tile_budget = vmem_limit - 8 * 2**20

    Bp = _round_up(B, b_mult)
    b_blk = _choose_b_blk(Bp, b_mult, n_cores)
    Bp = _round_up(Bp, b_blk)

    # batch-first -> time-major; pad batch (padded rows are zero -> h/c stay zero there).
    x_tm = jnp.transpose(x, (1, 0, 2)).astype(compute_dtype)
    if Bp != B:
        x_tm = jnp.pad(x_tm, ((0, 0), (0, Bp - B), (0, 0)))

    acts = x_tm
    n_layers = len(params["layers"])
    probs_pad = None
    for li, lp in enumerate(params["layers"]):
        w_ih_t = lp["w_ih_t_pad"].astype(compute_dtype)
        w_hh_t = lp["w_hh_t_pad"].astype(compute_dtype)
        d_in = w_ih_t.shape[0]
        last = li == n_layers - 1
        t_blk = _choose_t_blk(T, b_blk, d_in, Hp, Cp if last else 0, bytes_act, tile_budget)
        if not last:
            acts = lstm_layer_seq(acts, w_ih_t, lp["b_pad"], w_hh_t,
                                  t_blk=t_blk, b_blk=b_blk,
                                  out_dtype=compute_dtype, vmem_limit=vmem_limit)
        else:
            probs_pad = lstm_layer_last_fc_softmax(
                acts, w_ih_t, lp["b_pad"], w_hh_t,
                params["fc_w_t_pad"].astype(compute_dtype), params["fc_b_pad"],
                t_blk=t_blk, b_blk=b_blk, vmem_limit=vmem_limit)
    return probs_pad[:B, :C]


# ------------------------------ pure-JAX reference (f32) -------------------------------
def lstm_forward_ref(params, x):
    B = x.shape[0]
    h_seq = jnp.transpose(x, (1, 0, 2)).astype(jnp.float32)
    for lp in params["layers"]:
        H = lp["w_hh_t"].shape[0]
        h0 = jnp.zeros((B, H), jnp.float32)
        c0 = jnp.zeros((B, H), jnp.float32)

        def step(carry, x_t, lp=lp, H=H):
            h, c = carry
            g = x_t @ lp["w_ih_t"] + h @ lp["w_hh_t"] + lp["b"][0]
            i = jax.nn.sigmoid(g[:, :H]); f = jax.nn.sigmoid(g[:, H:2 * H])
            gg = jnp.tanh(g[:, 2 * H:3 * H]); o = jax.nn.sigmoid(g[:, 3 * H:])
            c = f * c + i * gg
            h = o * jnp.tanh(c)
            return (h, c), h

        (_, _), h_seq = jax.lax.scan(step, (h0, c0), h_seq)
    logits = h_seq[-1] @ params["fc_w_t"] + params["fc_b"]
    return jax.nn.softmax(logits, axis=1)


if __name__ == "__main__":
    B, T, D, H, L, C = 2, 8, 16, 32, 2, 10
    key = jax.random.PRNGKey(0)
    kp, kx = jax.random.split(key)
    params = init_params(kp, D, H, L, C)
    x = jax.random.normal(kx, (B, T, D), jnp.float32)

    ref = jax.block_until_ready(lstm_forward_ref(params, x))

    # f32 matmul path: tight check against the pure-JAX reference.
    out_f32 = jax.block_until_ready(lstm_forward(params, x, compute_dtype=jnp.float32))
    assert out_f32.shape == (B, C)
    assert jnp.allclose(jnp.sum(out_f32, axis=1), 1.0, atol=5e-3)
    assert jnp.allclose(out_f32, ref, atol=5e-3, rtol=5e-3)

    # bf16 matmul path (default, MXU-peak on v6e/v7x): looser tolerance for bf16 drift.
    out_bf16 = jax.block_until_ready(lstm_forward(params, x))
    assert out_bf16.shape == (B, C)
    assert jnp.allclose(jnp.sum(out_bf16, axis=1), 1.0, atol=5e-3)
    assert jnp.allclose(out_bf16, ref, atol=2e-2, rtol=2e-2)

    print("KERNEL_OK")
</pallas_src>

<mosaic_0001>
module attributes {stable_mosaic.version = 11 : i64} {
  func.func @_copy(%arg0: i32, %arg1: memref<8x128xf32, #tpu.memory_space<vmem>>, %arg2: memref<8x128xf32, #tpu.memory_space<vmem>>) attributes {dimension_semantics = [#tpu.dimension_semantics<arbitrary>], iteration_bounds = array<i64: 1>, scalar_prefetch = 0 : i64, scratch_operands = 0 : i64, tpu.core_type = #tpu.core_type<tc>, window_params = [{pipeline_mode = #tpu.pipeline_mode<synchronous>, transform_indices = @transform_0, window_bounds = array<i64: 8, 128>}, {pipeline_mode = #tpu.pipeline_mode<synchronous>, transform_indices = @transform_1, window_bounds = array<i64: 8, 128>}]} {
    %c0 = arith.constant 0 : index
    %c0_0 = arith.constant 0 : index
    %0 = vector.load %arg1[%c0, %c0_0] : memref<8x128xf32, #tpu.memory_space<vmem>>, vector<8x128xf32>
    %c0_1 = arith.constant 0 : index
    %c0_2 = arith.constant 0 : index
    %1 = vector.load %arg2[%c0_1, %c0_2] : memref<8x128xf32, #tpu.memory_space<vmem>>, vector<8x128xf32>
    tpu.vector_store %arg2[%c0_1, %c0_2], %0 {strides = array<i32>} : memref<8x128xf32, #tpu.memory_space<vmem>>, vector<8x128xf32>,
    return
  }
  func.func @transform_0(%arg0: i32) -> (i32, i32) {
    %c0_i32 = arith.constant 0 : i32
    %c0_i32_0 = arith.constant 0 : i32
    %c0_i32_1 = arith.constant 0 : i32
    return %c0_i32, %c0_i32_0 : i32, i32
  }
  func.func @transform_1(%arg0: i32) -> (i32, i32) {
    %c0_i32 = arith.constant 0 : i32
    %c0_i32_0 = arith.constant 0 : i32
    %c0_i32_1 = arith.constant 0 : i32
    return %c0_i32, %c0_i32_0 : i32, i32
  }
}

module attributes {stable_mosaic.version = 11 : i64} {
  func.func @_lstm_seq_kernel(%arg0: i32, %arg1: i32, %arg2: memref<8x8x16xf32, #tpu.memory_space<vmem>>, %arg3: memref<16x512xf32, #tpu.memory_space<vmem>>, %arg4: memref<1x512xf32, #tpu.memory_space<vmem>>, %arg5: memref<128x512xf32, #tpu.memory_space<vmem>>, %arg6: memref<8x8x128xf32, #tpu.memory_space<vmem>>, %arg7: memref<8x128xf32, #tpu.memory_space<vmem>>, %arg8: memref<8x128xf32, #tpu.memory_space<vmem>>) attributes {dimension_semantics = [#tpu.dimension_semantics<parallel>, #tpu.dimension_semantics<arbitrary>], iteration_bounds = array<i64: 1, 1>, scalar_prefetch = 0 : i64, scratch_operands = 2 : i64, tpu.core_type = #tpu.core_type<tc>, window_params = [{transform_indices = @transform_0, window_bounds = array<i64: 8, 8, 16>}, {pipeline_mode = #tpu.pipeline_mode<synchronous>, transform_indices = @transform_1, window_bounds = array<i64: 16, 512>}, {pipeline_mode = #tpu.pipeline_mode<synchronous>, transform_indices = @transform_2, window_bounds = array<i64: 1, 512>}, {pipeline_mode = #tpu.pipeline_mode<synchronous>, transform_indices = @transform_3, window_bounds = array<i64: 128, 512>}, {transform_indices = @transform_4, window_bounds = array<i64: 8, 8, 128>}]} {
    %c0_i32 = arith.constant 0 : i32
    %0 = arith.cmpi eq, %arg1, %c0_i32 : i32
    %1 = arith.extui %0 : i1 to i32
    %c0_i32_0 = arith.constant 0 : i32
    %2 = arith.cmpi ne, %1, %c0_i32_0 : i32
    scf.if %2 {
      %cst_86 = arith.constant 0.000000e+00 : f32
      %306 = vector.broadcast %cst_86 : f32 to vector<8x128xf32>
      %c0_87 = arith.constant 0 : index
      %c0_88 = arith.constant 0 : index
      %307 = vector.load %arg7[%c0_87, %c0_88] : memref<8x128xf32, #tpu.memory_space<vmem>>, vector<8x128xf32>
      tpu.vector_store %arg7[%c0_87, %c0_88], %306 {strides = array<i32>} : memref<8x128xf32, #tpu.memory_space<vmem>>, vector<8x128xf32>,
      %cst_89 = arith.constant 0.000000e+00 : f32
      %308 = vector.broadcast %cst_89 : f32 to vector<8x128xf32>
      %c0_90 = arith.constant 0 : index
      %c0_91 = arith.constant 0 : index
      %309 = vector.load %arg8[%c0_90, %c0_91] : memref<8x128xf32, #tpu.memory_space<vmem>>, vector<8x128xf32>
      tpu.vector_store %arg8[%c0_90, %c0_91], %308 {strides = array<i32>} : memref<8x128xf32, #tpu.memory_space<vmem>>, vector<8x128xf32>,
    } else {
    }
    %c0 = arith.constant 0 : index
    %c0_1 = arith.constant 0 : index
    %3 = vector.load %arg3[%c0, %c0_1] : memref<16x512xf32, #tpu.memory_space<vmem>>, vector<16x512xf32>
    %c0_2 = arith.constant 0 : index
    %c0_3 = arith.constant 0 : index
    %4 = vector.load %arg5[%c0_2, %c0_3] : memref<128x512xf32, #tpu.memory_space<vmem>>, vector<128x512xf32>
    %c0_4 = arith.constant 0 : index
    %c0_5 = arith.constant 0 : index
    %5 = vector.load %arg4[%c0_4, %c0_5] : memref<1x512xf32, #tpu.memory_space<vmem>>, vector<1x512xf32>
    %c0_6 = arith.constant 0 : index
    %c0_7 = arith.constant 0 : index
    %6 = vector.load %arg7[%c0_6, %c0_7] : memref<8x128xf32, #tpu.memory_space<vmem>>, vector<8x128xf32>
    %c0_8 = arith.constant 0 : index
    %c0_9 = arith.constant 0 : index
    %7 = vector.load %arg8[%c0_8, %c0_9] : memref<8x128xf32, #tpu.memory_space<vmem>>, vector<8x128xf32>
    %c0_i32_10 = arith.constant 0 : i32
    %8 = arith.index_cast %c0_i32_10 : i32 to index
    %c0_11 = arith.constant 0 : index
    %c0_12 = arith.constant 0 : index
    %9 = vector.load %arg2[%8, %c0_11, %c0_12] : memref<8x8x16xf32, #tpu.memory_space<vmem>>, vector<1x8x16xf32>
    %10 = vector.shape_cast %9 : vector<1x8x16xf32> to vector<8x16xf32>
    %cst = arith.constant dense<0.000000e+00> : vector<8x512xf32>
    %11 = tpu.matmul %10, %3, %cst {dimension_numbers = #tpu.dot_dimension_numbers<[1], [0], [0], [1], [0, 0, 1, 1], [], []>} : vector<8x16xf32>, vector<16x512xf32>, vector<8x512xf32> -> vector<8x512xf32>
    %12 = vector.broadcast %5 : vector<1x512xf32> to vector<8x512xf32>
    %13 = arith.addf %11, %12 : vector<8x512xf32>
    %cst_13 = arith.constant dense<0.000000e+00> : vector<8x512xf32>
    %14 = tpu.matmul %6, %4, %cst_13 {dimension_numbers = #tpu.dot_dimension_numbers<[1], [0], [0], [1], [0, 0, 1, 1], [], []>} : vector<8x128xf32>, vector<128x512xf32>, vector<8x512xf32> -> vector<8x512xf32>
    %15 = arith.addf %13, %14 : vector<8x512xf32>
    %16 = vector.extract_strided_slice %15 {offsets = [0, 0], sizes = [8, 128], strides = [1, 1]} : vector<8x512xf32> to vector<8x128xf32>
    %17 = arith.negf %16 : vector<8x128xf32>
    %18 = math.exp %17 : vector<8x128xf32>
    %cst_14 = arith.constant 1.000000e+00 : f32
    %19 = vector.broadcast %cst_14 : f32 to vector<8x128xf32>
    %20 = arith.addf %19, %18 : vector<8x128xf32>
    %21 = arith.divf %19, %20 : vector<8x128xf32>
    %22 = vector.extract_strided_slice %15 {offsets = [0, 128], sizes = [8, 128], strides = [1, 1]} : vector<8x512xf32> to vector<8x128xf32>
    %23 = arith.negf %22 : vector<8x128xf32>
    %24 = math.exp %23 : vector<8x128xf32>
    %cst_15 = arith.constant 1.000000e+00 : f32
    %25 = vector.broadcast %cst_15 : f32 to vector<8x128xf32>
    %26 = arith.addf %25, %24 : vector<8x128xf32>
    %27 = arith.divf %25, %26 : vector<8x128xf32>
    %28 = vector.extract_strided_slice %15 {offsets = [0, 256], sizes = [8, 128], strides = [1, 1]} : vector<8x512xf32> to vector<8x128xf32>
    %29 = math.tanh %28 : vector<8x128xf32>
    %30 = vector.extract_strided_slice %15 {offsets = [0, 384], sizes = [8, 128], strides = [1, 1]} : vector<8x512xf32> to vector<8x128xf32>
    %31 = arith.negf %30 : vector<8x128xf32>
    %32 = math.exp %31 : vector<8x128xf32>
    %cst_16 = arith.constant 1.000000e+00 : f32
    %33 = vector.broadcast %cst_16 : f32 to vector<8x128xf32>
    %34 = arith.addf %33, %32 : vector<8x128xf32>
    %35 = arith.divf %33, %34 : vector<8x128xf32>
    %36 = arith.mulf %27, %7 : vector<8x128xf32>
    %37 = arith.mulf %21, %29 : vector<8x128xf32>
    %38 = arith.addf %36, %37 : vector<8x128xf32>
    %39 = math.tanh %38 : vector<8x128xf32>
    %40 = arith.mulf %35, %39 : vector<8x128xf32>
    %41 = arith.index_cast %c0_i32_10 : i32 to index
    %c0_17 = arith.constant 0 : index
    %c0_18 = arith.constant 0 : index
    %42 = vector.load %arg6[%41, %c0_17, %c0_18] : memref<8x8x128xf32, #tpu.memory_space<vmem>>, vector<1x8x128xf32>
    %43 = vector.shape_cast %42 : vector<1x8x128xf32> to vector<8x128xf32>
    %44 = vector.shape_cast %40 : vector<8x128xf32> to vector<1x8x128xf32>
    tpu.vector_store %arg6[%41, %c0_17, %c0_18], %44 {strides = array<i32>} : memref<8x8x128xf32, #tpu.memory_space<vmem>>, vector<1x8x128xf32>,
    %c1_i32 = arith.constant 1 : i32
    %45 = arith.index_cast %c1_i32 : i32 to index
    %c0_19 = arith.constant 0 : index
    %c0_20 = arith.constant 0 : index
    %46 = vector.load %arg2[%45, %c0_19, %c0_20] : memref<8x8x16xf32, #tpu.memory_space<vmem>>, vector<1x8x16xf32>
    %47 = vector.shape_cast %46 : vector<1x8x16xf32> to vector<8x16xf32>
    %cst_21 = arith.constant dense<0.000000e+00> : vector<8x512xf32>
    %48 = tpu.matmul %47, %3, %cst_21 {dimension_numbers = #tpu.dot_dimension_numbers<[1], [0], [0], [1], [0, 0, 1, 1], [], []>} : vector<8x16xf32>, vector<16x512xf32>, vector<8x512xf32> -> vector<8x512xf32>
    %49 = vector.broadcast %5 : vector<1x512xf32> to vector<8x512xf32>
    %50 = arith.addf %48, %49 : vector<8x512xf32>
    %cst_22 = arith.constant dense<0.000000e+00> : vector<8x512xf32>
    %51 = tpu.matmul %40, %4, %cst_22 {dimension_numbers = #tpu.dot_dimension_numbers<[1], [0], [0], [1], [0, 0, 1, 1], [], []>} : vector<8x128xf32>, vector<128x512xf32>, vector<8x512xf32> -> vector<8x512xf32>
    %52 = arith.addf %50, %51 : vector<8x512xf32>
    %53 = vector.extract_strided_slice %52 {offsets = [0, 0], sizes = [8, 128], strides = [1, 1]} : vector<8x512xf32> to vector<8x128xf32>
    %54 = arith.negf %53 : vector<8x128xf32>
    %55 = math.exp %54 : vector<8x128xf32>
    %cst_23 = arith.constant 1.000000e+00 : f32
    %56 = vector.broadcast %cst_23 : f32 to vector<8x128xf32>
    %57 = arith.addf %56, %55 : vector<8x128xf32>
    %58 = arith.divf %56, %57 : vector<8x128xf32>
    %59 = vector.extract_strided_slice %52 {offsets = [0, 128], sizes = [8, 128], strides = [1, 1]} : vector<8x512xf32> to vector<8x128xf32>
    %60 = arith.negf %59 : vector<8x128xf32>
    %61 = math.exp %60 : vector<8x128xf32>
    %cst_24 = arith.constant 1.000000e+00 : f32
    %62 = vector.broadcast %cst_24 : f32 to vector<8x128xf32>
    %63 = arith.addf %62, %61 : vector<8x128xf32>
    %64 = arith.divf %62, %63 : vector<8x128xf32>
    %65 = vector.extract_strided_slice %52 {offsets = [0, 256], sizes = [8, 128], strides = [1, 1]} : vector<8x512xf32> to vector<8x128xf32>
    %66 = math.tanh %65 : vector<8x128xf32>
    %67 = vector.extract_strided_slice %52 {offsets = [0, 384], sizes = [8, 128], strides = [1, 1]} : vector<8x512xf32> to vector<8x128xf32>
    %68 = arith.negf %67 : vector<8x128xf32>
    %69 = math.exp %68 : vector<8x128xf32>
    %cst_25 = arith.constant 1.000000e+00 : f32
    %70 = vector.broadcast %cst_25 : f32 to vector<8x128xf32>
    %71 = arith.addf %70, %69 : vector<8x128xf32>
    %72 = arith.divf %70, %71 : vector<8x128xf32>
    %73 = arith.mulf %64, %38 : vector<8x128xf32>
    %74 = arith.mulf %58, %66 : vector<8x128xf32>
    %75 = arith.addf %73, %74 : vector<8x128xf32>
    %76 = math.tanh %75 : vector<8x128xf32>
    %77 = arith.mulf %72, %76 : vector<8x128xf32>
    %78 = arith.index_cast %c1_i32 : i32 to index
    %c0_26 = arith.constant 0 : index
    %c0_27 = arith.constant 0 : index
    %79 = vector.load %arg6[%78, %c0_26, %c0_27] : memref<8x8x128xf32, #tpu.memory_space<vmem>>, vector<1x8x128xf32>
    %80 = vector.shape_cast %79 : vector<1x8x128xf32> to vector<8x128xf32>
    %81 = vector.shape_cast %77 : vector<8x128xf32> to vector<1x8x128xf32>
    tpu.vector_store %arg6[%78, %c0_26, %c0_27], %81 {strides = array<i32>} : memref<8x8x128xf32, #tpu.memory_space<vmem>>, vector<1x8x128xf32>,
    %c2_i32 = arith.constant 2 : i32
    %82 = arith.index_cast %c2_i32 : i32 to index
    %c0_28 = arith.constant 0 : index
    %c0_29 = arith.constant 0 : index
    %83 = vector.load %arg2[%82, %c0_28, %c0_29] : memref<8x8x16xf32, #tpu.memory_space<vmem>>, vector<1x8x16xf32>
    %84 = vector.shape_cast %83 : vector<1x8x16xf32> to vector<8x16xf32>
    %cst_30 = arith.constant dense<0.000000e+00> : vector<8x512xf32>
    %85 = tpu.matmul %84, %3, %cst_30 {dimension_numbers = #tpu.dot_dimension_numbers<[1], [0], [0], [1], [0, 0, 1, 1], [], []>} : vector<8x16xf32>, vector<16x512xf32>, vector<8x512xf32> -> vector<8x512xf32>
    %86 = vector.broadcast %5 : vector<1x512xf32> to vector<8x512xf32>
    %87 = arith.addf %85, %86 : vector<8x512xf32>
    %cst_31 = arith.constant dense<0.000000e+00> : vector<8x512xf32>
    %88 = tpu.matmul %77, %4, %cst_31 {dimension_numbers = #tpu.dot_dimension_numbers<[1], [0], [0], [1], [0, 0, 1, 1], [], []>} : vector<8x128xf32>, vector<128x512xf32>, vector<8x512xf32> -> vector<8x512xf32>
    %89 = arith.addf %87, %88 : vector<8x512xf32>
    %90 = vector.extract_strided_slice %89 {offsets = [0, 0], sizes = [8, 128], strides = [1, 1]} : vector<8x512xf32> to vector<8x128xf32>
    %91 = arith.negf %90 : vector<8x128xf32>
    %92 = math.exp %91 : vector<8x128xf32>
    %cst_32 = arith.constant 1.000000e+00 : f32
    %93 = vector.broadcast %cst_32 : f32 to vector<8x128xf32>
    %94 = arith.addf %93, %92 : vector<8x128xf32>
    %95 = arith.divf %93, %94 : vector<8x128xf32>
    %96 = vector.extract_strided_slice %89 {offsets = [0, 128], sizes = [8, 128], strides = [1, 1]} : vector<8x512xf32> to vector<8x128xf32>
    %97 = arith.negf %96 : vector<8x128xf32>
    %98 = math.exp %97 : vector<8x128xf32>
    %cst_33 = arith.constant 1.000000e+00 : f32
    %99 = vector.broadcast %cst_33 : f32 to vector<8x128xf32>
    %100 = arith.addf %99, %98 : vector<8x128xf32>
    %101 = arith.divf %99, %100 : vector<8x128xf32>
    %102 = vector.extract_strided_slice %89 {offsets = [0, 256], sizes = [8, 128], strides = [1, 1]} : vector<8x512xf32> to vector<8x128xf32>
    %103 = math.tanh %102 : vector<8x128xf32>
    %104 = vector.extract_strided_slice %89 {offsets = [0, 384], sizes = [8, 128], strides = [1, 1]} : vector<8x512xf32> to vector<8x128xf32>
    %105 = arith.negf %104 : vector<8x128xf32>
    %106 = math.exp %105 : vector<8x128xf32>
    %cst_34 = arith.constant 1.000000e+00 : f32
    %107 = vector.broadcast %cst_34 : f32 to vector<8x128xf32>
    %108 = arith.addf %107, %106 : vector<8x128xf32>
    %109 = arith.divf %107, %108 : vector<8x128xf32>
    %110 = arith.mulf %101, %75 : vector<8x128xf32>
    %111 = arith.mulf %95, %103 : vector<8x128xf32>
    %112 = arith.addf %110, %111 : vector<8x128xf32>
    %113 = math.tanh %112 : vector<8x128xf32>
    %114 = arith.mulf %109, %113 : vector<8x128xf32>
    %115 = arith.index_cast %c2_i32 : i32 to index
    %c0_35 = arith.constant 0 : index
    %c0_36 = arith.constant 0 : index
    %116 = vector.load %arg6[%115, %c0_35, %c0_36] : memref<8x8x128xf32, #tpu.memory_space<vmem>>, vector<1x8x128xf32>
    %117 = vector.shape_cast %116 : vector<1x8x128xf32> to vector<8x128xf32>
    %118 = vector.shape_cast %114 : vector<8x128xf32> to vector<1x8x128xf32>
    tpu.vector_store %arg6[%115, %c0_35, %c0_36], %118 {strides = array<i32>} : memref<8x8x128xf32, #tpu.memory_space<vmem>>, vector<1x8x128xf32>,
    %c3_i32 = arith.constant 3 : i32
    %119 = arith.index_cast %c3_i32 : i32 to index
    %c0_37 = arith.constant 0 : index
    %c0_38 = arith.constant 0 : index
    %120 = vector.load %arg2[%119, %c0_37, %c0_38] : memref<8x8x16xf32, #tpu.memory_space<vmem>>, vector<1x8x16xf32>
    %121 = vector.shape_cast %120 : vector<1x8x16xf32> to vector<8x16xf32>
    %cst_39 = arith.constant dense<0.000000e+00> : vector<8x512xf32>
    %122 = tpu.matmul %121, %3, %cst_39 {dimension_numbers = #tpu.dot_dimension_numbers<[1], [0], [0], [1], [0, 0, 1, 1], [], []>} : vector<8x16xf32>, vector<16x512xf32>, vector<8x512xf32> -> vector<8x512xf32>
    %123 = vector.broadcast %5 : vector<1x512xf32> to vector<8x512xf32>
    %124 = arith.addf %122, %123 : vector<8x512xf32>
    %cst_40 = arith.constant dense<0.000000e+00> : vector<8x512xf32>
    %125 = tpu.matmul %114, %4, %cst_40 {dimension_numbers = #tpu.dot_dimension_numbers<[1], [0], [0], [1], [0, 0, 1, 1], [], []>} : vector<8x128xf32>, vector<128x512xf32>, vector<8x512xf32> -> vector<8x512xf32>
    %126 = arith.addf %124, %125 : vector<8x512xf32>
    %127 = vector.extract_strided_slice %126 {offsets = [0, 0], sizes = [8, 128], strides = [1, 1]} : vector<8x512xf32> to vector<8x128xf32>
    %128 = arith.negf %127 : vector<8x128xf32>
    %129 = math.exp %128 : vector<8x128xf32>
    %cst_41 = arith.constant 1.000000e+00 : f32
    %130 = vector.broadcast %cst_41 : f32 to vector<8x128xf32>
    %131 = arith.addf %130, %129 : vector<8x128xf32>
    %132 = arith.divf %130, %131 : vector<8x128xf32>
    %133 = vector.extract_strided_slice %126 {offsets = [0, 128], sizes = [8, 128], strides = [1, 1]} : vector<8x512xf32> to vector<8x128xf32>
    %134 = arith.negf %133 : vector<8x128xf32>
    %135 = math.exp %134 : vector<8x128xf32>
    %cst_42 = arith.constant 1.000000e+00 : f32
    %136 = vector.broadcast %cst_42 : f32 to vector<8x128xf32>
    %137 = arith.addf %136, %135 : vector<8x128xf32>
    %138 = arith.divf %136, %137 : vector<8x128xf32>
    %139 = vector.extract_strided_slice %126 {offsets = [0, 256], sizes = [8, 128], strides = [1, 1]} : vector<8x512xf32> to vector<8x128xf32>
    %140 = math.tanh %139 : vector<8x128xf32>
    %141 = vector.extract_strided_slice %126 {offsets = [0, 384], sizes = [8, 128], strides = [1, 1]} : vector<8x512xf32> to vector<8x128xf32>
    %142 = arith.negf %141 : vector<8x128xf32>
    %143 = math.exp %142 : vector<8x128xf32>
    %cst_43 = arith.constant 1.000000e+00 : f32
    %144 = vector.broadcast %cst_43 : f32 to vector<8x128xf32>
    %145 = arith.addf %144, %143 : vector<8x128xf32>
    %146 = arith.divf %144, %145 : vector<8x128xf32>
    %147 = arith.mulf %138, %112 : vector<8x128xf32>
    %148 = arith.mulf %132, %140 : vector<8x128xf32>
    %149 = arith.addf %147, %148 : vector<8x128xf32>
    %150 = math.tanh %149 : vector<8x128xf32>
    %151 = arith.mulf %146, %150 : vector<8x128xf32>
    %152 = arith.index_cast %c3_i32 : i32 to index
    %c0_44 = arith.constant 0 : index
    %c0_45 = arith.constant 0 : index
    %153 = vector.load %arg6[%152, %c0_44, %c0_45] : memref<8x8x128xf32, #tpu.memory_space<vmem>>, vector<1x8x128xf32>
    %154 = vector.shape_cast %153 : vector<1x8x128xf32> to vector<8x128xf32>
    %155 = vector.shape_cast %151 : vector<8x128xf32> to vector<1x8x128xf32>
    tpu.vector_store %arg6[%152, %c0_44, %c0_45], %155 {strides = array<i32>} : memref<8x8x128xf32, #tpu.memory_space<vmem>>, vector<1x8x128xf32>,
    %c4_i32 = arith.constant 4 : i32
    %156 = arith.index_cast %c4_i32 : i32 to index
    %c0_46 = arith.constant 0 : index
    %c0_47 = arith.constant 0 : index
    %157 = vector.load %arg2[%156, %c0_46, %c0_47] : memref<8x8x16xf32, #tpu.memory_space<vmem>>, vector<1x8x16xf32>
    %158 = vector.shape_cast %157 : vector<1x8x16xf32> to vector<8x16xf32>
    %cst_48 = arith.constant dense<0.000000e+00> : vector<8x512xf32>
    %159 = tpu.matmul %158, %3, %cst_48 {dimension_numbers = #tpu.dot_dimension_numbers<[1], [0], [0], [1], [0, 0, 1, 1], [], []>} : vector<8x16xf32>, vector<16x512xf32>, vector<8x512xf32> -> vector<8x512xf32>
    %160 = vector.broadcast %5 : vector<1x512xf32> to vector<8x512xf32>
    %161 = arith.addf %159, %160 : vector<8x512xf32>
    %cst_49 = arith.constant dense<0.000000e+00> : vector<8x512xf32>
    %162 = tpu.matmul %151, %4, %cst_49 {dimension_numbers = #tpu.dot_dimension_numbers<[1], [0], [0], [1], [0, 0, 1, 1], [], []>} : vector<8x128xf32>, vector<128x512xf32>, vector<8x512xf32> -> vector<8x512xf32>
    %163 = arith.addf %161, %162 : vector<8x512xf32>
    %164 = vector.extract_strided_slice %163 {offsets = [0, 0], sizes = [8, 128], strides = [1, 1]} : vector<8x512xf32> to vector<8x128xf32>
    %165 = arith.negf %164 : vector<8x128xf32>
    %166 = math.exp %165 : vector<8x128xf32>
    %cst_50 = arith.constant 1.000000e+00 : f32
    %167 = vector.broadcast %cst_50 : f32 to vector<8x128xf32>
    %168 = arith.addf %167, %166 : vector<8x128xf32>
    %169 = arith.divf %167, %168 : vector<8x128xf32>
    %170 = vector.extract_strided_slice %163 {offsets = [0, 128], sizes = [8, 128], strides = [1, 1]} : vector<8x512xf32> to vector<8x128xf32>
    %171 = arith.negf %170 : vector<8x128xf32>
    %172 = math.exp %171 : vector<8x128xf32>
    %cst_51 = arith.constant 1.000000e+00 : f32
    %173 = vector.broadcast %cst_51 : f32 to vector<8x128xf32>
    %174 = arith.addf %173, %172 : vector<8x128xf32>
    %175 = arith.divf %173, %174 : vector<8x128xf32>
    %176 = vector.extract_strided_slice %163 {offsets = [0, 256], sizes = [8, 128], strides = [1, 1]} : vector<8x512xf32> to vector<8x128xf32>
    %177 = math.tanh %176 : vector<8x128xf32>
    %178 = vector.extract_strided_slice %163 {offsets = [0, 384], sizes = [8, 128], strides = [1, 1]} : vector<8x512xf32> to vector<8x128xf32>
    %179 = arith.negf %178 : vector<8x128xf32>
    %180 = math.exp %179 : vector<8x128xf32>
    %cst_52 = arith.constant 1.000000e+00 : f32
    %181 = vector.broadcast %cst_52 : f32 to vector<8x128xf32>
    %182 = arith.addf %181, %180 : vector<8x128xf32>
    %183 = arith.divf %181, %182 : vector<8x128xf32>
    %184 = arith.mulf %175, %149 : vector<8x128xf32>
    %185 = arith.mulf %169, %177 : vector<8x128xf32>
    %186 = arith.addf %184, %185 : vector<8x128xf32>
    %187 = math.tanh %186 : vector<8x128xf32>
    %188 = arith.mulf %183, %187 : vector<8x128xf32>
    %189 = arith.index_cast %c4_i32 : i32 to index
    %c0_53 = arith.constant 0 : index
    %c0_54 = arith.constant 0 : index
    %190 = vector.load %arg6[%189, %c0_53, %c0_54] : memref<8x8x128xf32, #tpu.memory_space<vmem>>, vector<1x8x128xf32>
    %191 = vector.shape_cast %190 : vector<1x8x128xf32> to vector<8x128xf32>
    %192 = vector.shape_cast %188 : vector<8x128xf32> to vector<1x8x128xf32>
    tpu.vector_store %arg6[%189, %c0_53, %c0_54], %192 {strides = array<i32>} : memref<8x8x128xf32, #tpu.memory_space<vmem>>, vector<1x8x128xf32>,
    %c5_i32 = arith.constant 5 : i32
    %193 = arith.index_cast %c5_i32 : i32 to index
    %c0_55 = arith.constant 0 : index
    %c0_56 = arith.constant 0 : index
    %194 = vector.load %arg2[%193, %c0_55, %c0_56] : memref<8x8x16xf32, #tpu.memory_space<vmem>>, vector<1x8x16xf32>
    %195 = vector.shape_cast %194 : vector<1x8x16xf32> to vector<8x16xf32>
    %cst_57 = arith.constant dense<0.000000e+00> : vector<8x512xf32>
    %196 = tpu.matmul %195, %3, %cst_57 {dimension_numbers = #tpu.dot_dimension_numbers<[1], [0], [0], [1], [0, 0, 1, 1], [], []>} : vector<8x16xf32>, vector<16x512xf32>, vector<8x512xf32> -> vector<8x512xf32>
    %197 = vector.broadcast %5 : vector<1x512xf32> to vector<8x512xf32>
    %198 = arith.addf %196, %197 : vector<8x512xf32>
    %cst_58 = arith.constant dense<0.000000e+00> : vector<8x512xf32>
    %199 = tpu.matmul %188, %4, %cst_58 {dimension_numbers = #tpu.dot_dimension_numbers<[1], [0], [0], [1], [0, 0, 1, 1], [], []>} : vector<8x128xf32>, vector<128x512xf32>, vector<8x512xf32> -> vector<8x512xf32>
    %200 = arith.addf %198, %199 : vector<8x512xf32>
    %201 = vector.extract_strided_slice %200 {offsets = [0, 0], sizes = [8, 128], strides = [1, 1]} : vector<8x512xf32> to vector<8x128xf32>
    %202 = arith.negf %201 : vector<8x128xf32>
    %203 = math.exp %202 : vector<8x128xf32>
    %cst_59 = arith.constant 1.000000e+00 : f32
    %204 = vector.broadcast %cst_59 : f32 to vector<8x128xf32>
    %205 = arith.addf %204, %203 : vector<8x128xf32>
    %206 = arith.divf %204, %205 : vector<8x128xf32>
    %207 = vector.extract_strided_slice %200 {offsets = [0, 128], sizes = [8, 128], strides = [1, 1]} : vector<8x512xf32> to vector<8x128xf32>
    %208 = arith.negf %207 : vector<8x128xf32>
    %209 = math.exp %208 : vector<8x128xf32>
    %cst_60 = arith.constant 1.000000e+00 : f32
    %210 = vector.broadcast %cst_60 : f32 to vector<8x128xf32>
    %211 = arith.addf %210, %209 : vector<8x128xf32>
    %212 = arith.divf %210, %211 : vector<8x128xf32>
    %213 = vector.extract_strided_slice %200 {offsets = [0, 256], sizes = [8, 128], strides = [1, 1]} : vector<8x512xf32> to vector<8x128xf32>
    %214 = math.tanh %213 : vector<8x128xf32>
    %215 = vector.extract_strided_slice %200 {offsets = [0, 384], sizes = [8, 128], strides = [1, 1]} : vector<8x512xf32> to vector<8x128xf32>
    %216 = arith.negf %215 : vector<8x128xf32>
    %217 = math.exp %216 : vector<8x128xf32>
    %cst_61 = arith.constant 1.000000e+00 : f32
    %218 = vector.broadcast %cst_61 : f32 to vector<8x128xf32>
    %219 = arith.addf %218, %217 : vector<8x128xf32>
    %220 = arith.divf %218, %219 : vector<8x128xf32>
    %221 = arith.mulf %212, %186 : vector<8x128xf32>
    %222 = arith.mulf %206, %214 : vector<8x128xf32>
    %223 = arith.addf %221, %222 : vector<8x128xf32>
    %224 = math.tanh %223 : vector<8x128xf32>
    %225 = arith.mulf %220, %224 : vector<8x128xf32>
    %226 = arith.index_cast %c5_i32 : i32 to index
    %c0_62 = arith.constant 0 : index
    %c0_63 = arith.constant 0 : index
    %227 = vector.load %arg6[%226, %c0_62, %c0_63] : memref<8x8x128xf32, #tpu.memory_space<vmem>>, vector<1x8x128xf32>
    %228 = vector.shape_cast %227 : vector<1x8x128xf32> to vector<8x128xf32>
    %229 = vector.shape_cast %225 : vector<8x128xf32> to vector<1x8x128xf32>
    tpu.vector_store %arg6[%226, %c0_62, %c0_63], %229 {strides = array<i32>} : memref<8x8x128xf32, #tpu.memory_space<vmem>>, vector<1x8x128xf32>,
    %c6_i32 = arith.constant 6 : i32
    %230 = arith.index_cast %c6_i32 : i32 to index
    %c0_64 = arith.constant 0 : index
    %c0_65 = arith.constant 0 : index
    %231 = vector.load %arg2[%230, %c0_64, %c0_65] : memref<8x8x16xf32, #tpu.memory_space<vmem>>, vector<1x8x16xf32>
    %232 = vector.shape_cast %231 : vector<1x8x16xf32> to vector<8x16xf32>
    %cst_66 = arith.constant dense<0.000000e+00> : vector<8x512xf32>
    %233 = tpu.matmul %232, %3, %cst_66 {dimension_numbers = #tpu.dot_dimension_numbers<[1], [0], [0], [1], [0, 0, 1, 1], [], []>} : vector<8x16xf32>, vector<16x512xf32>, vector<8x512xf32> -> vector<8x512xf32>
    %234 = vector.broadcast %5 : vector<1x512xf32> to vector<8x512xf32>
    %235 = arith.addf %233, %234 : vector<8x512xf32>
    %cst_67 = arith.constant dense<0.000000e+00> : vector<8x512xf32>
    %236 = tpu.matmul %225, %4, %cst_67 {dimension_numbers = #tpu.dot_dimension_numbers<[1], [0], [0], [1], [0, 0, 1, 1], [], []>} : vector<8x128xf32>, vector<128x512xf32>, vector<8x512xf32> -> vector<8x512xf32>
    %237 = arith.addf %235, %236 : vector<8x512xf32>
    %238 = vector.extract_strided_slice %237 {offsets = [0, 0], sizes = [8, 128], strides = [1, 1]} : vector<8x512xf32> to vector<8x128xf32>
    %239 = arith.negf %238 : vector<8x128xf32>
    %240 = math.exp %239 : vector<8x128xf32>
    %cst_68 = arith.constant 1.000000e+00 : f32
    %241 = vector.broadcast %cst_68 : f32 to vector<8x128xf32>
    %242 = arith.addf %241, %240 : vector<8x128xf32>
    %243 = arith.divf %241, %242 : vector<8x128xf32>
    %244 = vector.extract_strided_slice %237 {offsets = [0, 128], sizes = [8, 128], strides = [1, 1]} : vector<8x512xf32> to vector<8x128xf32>
    %245 = arith.negf %244 : vector<8x128xf32>
    %246 = math.exp %245 : vector<8x128xf32>
    %cst_69 = arith.constant 1.000000e+00 : f32
    %247 = vector.broadcast %cst_69 : f32 to vector<8x128xf32>
    %248 = arith.addf %247, %246 : vector<8x128xf32>
    %249 = arith.divf %247, %248 : vector<8x128xf32>
    %250 = vector.extract_strided_slice %237 {offsets = [0, 256], sizes = [8, 128], strides = [1, 1]} : vector<8x512xf32> to vector<8x128xf32>
    %251 = math.tanh %250 : vector<8x128xf32>
    %252 = vector.extract_strided_slice %237 {offsets = [0, 384], sizes = [8, 128], strides = [1, 1]} : vector<8x512xf32> to vector<8x128xf32>
    %253 = arith.negf %252 : vector<8x128xf32>
    %254 = math.exp %253 : vector<8x128xf32>
    %cst_70 = arith.constant 1.000000e+00 : f32
    %255 = vector.broadcast %cst_70 : f32 to vector<8x128xf32>
    %256 = arith.addf %255, %254 : vector<8x128xf32>
    %257 = arith.divf %255, %256 : vector<8x128xf32>
    %258 = arith.mulf %249, %223 : vector<8x128xf32>
    %259 = arith.mulf %243, %251 : vector<8x128xf32>
    %260 = arith.addf %258, %259 : vector<8x128xf32>
    %261 = math.tanh %260 : vector<8x128xf32>
    %262 = arith.mulf %257, %261 : vector<8x128xf32>
    %263 = arith.index_cast %c6_i32 : i32 to index
    %c0_71 = arith.constant 0 : index
    %c0_72 = arith.constant 0 : index
    %264 = vector.load %arg6[%263, %c0_71, %c0_72] : memref<8x8x128xf32, #tpu.memory_space<vmem>>, vector<1x8x128xf32>
    %265 = vector.shape_cast %264 : vector<1x8x128xf32> to vector<8x128xf32>
    %266 = vector.shape_cast %262 : vector<8x128xf32> to vector<1x8x128xf32>
    tpu.vector_store %arg6[%263, %c0_71, %c0_72], %266 {strides = array<i32>} : memref<8x8x128xf32, #tpu.memory_space<vmem>>, vector<1x8x128xf32>,
    %c7_i32 = arith.constant 7 : i32
    %267 = arith.index_cast %c7_i32 : i32 to index
    %c0_73 = arith.constant 0 : index
    %c0_74 = arith.constant 0 : index
    %268 = vector.load %arg2[%267, %c0_73, %c0_74] : memref<8x8x16xf32, #tpu.memory_space<vmem>>, vector<1x8x16xf32>
    %269 = vector.shape_cast %268 : vector<1x8x16xf32> to vector<8x16xf32>
    %cst_75 = arith.constant dense<0.000000e+00> : vector<8x512xf32>
    %270 = tpu.matmul %269, %3, %cst_75 {dimension_numbers = #tpu.dot_dimension_numbers<[1], [0], [0], [1], [0, 0, 1, 1], [], []>} : vector<8x16xf32>, vector<16x512xf32>, vector<8x512xf32> -> vector<8x512xf32>
    %271 = vector.broadcast %5 : vector<1x512xf32> to vector<8x512xf32>
    %272 = arith.addf %270, %271 : vector<8x512xf32>
    %cst_76 = arith.constant dense<0.000000e+00> : vector<8x512xf32>
    %273 = tpu.matmul %262, %4, %cst_76 {dimension_numbers = #tpu.dot_dimension_numbers<[1], [0], [0], [1], [0, 0, 1, 1], [], []>} : vector<8x128xf32>, vector<128x512xf32>, vector<8x512xf32> -> vector<8x512xf32>
    %274 = arith.addf %272, %273 : vector<8x512xf32>
    %275 = vector.extract_strided_slice %274 {offsets = [0, 0], sizes = [8, 128], strides = [1, 1]} : vector<8x512xf32> to vector<8x128xf32>
    %276 = arith.negf %275 : vector<8x128xf32>
    %277 = math.exp %276 : vector<8x128xf32>
    %cst_77 = arith.constant 1.000000e+00 : f32
    %278 = vector.broadcast %cst_77 : f32 to vector<8x128xf32>
    %279 = arith.addf %278, %277 : vector<8x128xf32>
    %280 = arith.divf %278, %279 : vector<8x128xf32>
    %281 = vector.extract_strided_slice %274 {offsets = [0, 128], sizes = [8, 128], strides = [1, 1]} : vector<8x512xf32> to vector<8x128xf32>
    %282 = arith.negf %281 : vector<8x128xf32>
    %283 = math.exp %282 : vector<8x128xf32>
    %cst_78 = arith.constant 1.000000e+00 : f32
    %284 = vector.broadcast %cst_78 : f32 to vector<8x128xf32>
    %285 = arith.addf %284, %283 : vector<8x128xf32>
    %286 = arith.divf %284, %285 : vector<8x128xf32>
    %287 = vector.extract_strided_slice %274 {offsets = [0, 256], sizes = [8, 128], strides = [1, 1]} : vector<8x512xf32> to vector<8x128xf32>
    %288 = math.tanh %287 : vector<8x128xf32>
    %289 = vector.extract_strided_slice %274 {offsets = [0, 384], sizes = [8, 128], strides = [1, 1]} : vector<8x512xf32> to vector<8x128xf32>
    %290 = arith.negf %289 : vector<8x128xf32>
    %291 = math.exp %290 : vector<8x128xf32>
    %cst_79 = arith.constant 1.000000e+00 : f32
    %292 = vector.broadcast %cst_79 : f32 to vector<8x128xf32>
    %293 = arith.addf %292, %291 : vector<8x128xf32>
    %294 = arith.divf %292, %293 : vector<8x128xf32>
    %295 = arith.mulf %286, %260 : vector<8x128xf32>
    %296 = arith.mulf %280, %288 : vector<8x128xf32>
    %297 = arith.addf %295, %296 : vector<8x128xf32>
    %298 = math.tanh %297 : vector<8x128xf32>
    %299 = arith.mulf %294, %298 : vector<8x128xf32>
    %300 = arith.index_cast %c7_i32 : i32 to index
    %c0_80 = arith.constant 0 : index
    %c0_81 = arith.constant 0 : index
    %301 = vector.load %arg6[%300, %c0_80, %c0_81] : memref<8x8x128xf32, #tpu.memory_space<vmem>>, vector<1x8x128xf32>
    %302 = vector.shape_cast %301 : vector<1x8x128xf32> to vector<8x128xf32>
    %303 = vector.shape_cast %299 : vector<8x128xf32> to vector<1x8x128xf32>
    tpu.vector_store %arg6[%300, %c0_80, %c0_81], %303 {strides = array<i32>} : memref<8x8x128xf32, #tpu.memory_space<vmem>>, vector<1x8x128xf32>,
    %c8_i32 = arith.constant 8 : i32
    %c0_82 = arith.constant 0 : index
    %c0_83 = arith.constant 0 : index
    %304 = vector.load %arg7[%c0_82, %c0_83] : memref<8x128xf32, #tpu.memory_space<vmem>>, vector<8x128xf32>
    tpu.vector_store %arg7[%c0_82, %c0_83], %299 {strides = array<i32>} : memref<8x128xf32, #tpu.memory_space<vmem>>, vector<8x128xf32>,
    %c0_84 = arith.constant 0 : index
    %c0_85 = arith.constant 0 : index
    %305 = vector.load %arg8[%c0_84, %c0_85] : memref<8x128xf32, #tpu.memory_space<vmem>>, vector<8x128xf32>
    tpu.vector_store %arg8[%c0_84, %c0_85], %297 {strides = array<i32>} : memref<8x128xf32, #tpu.memory_space<vmem>>, vector<8x128xf32>,
    return
  }
  func.func @transform_0(%arg0: i32, %arg1: i32) -> (i32, i32, i32) {
    %c0_i32 = arith.constant 0 : i32
    %c0_i32_0 = arith.constant 0 : i32
    return %arg1, %arg0, %c0_i32 : i32, i32, i32
  }
  func.func @transform_1(%arg0: i32, %arg1: i32) -> (i32, i32) {
    %c0_i32 = arith.constant 0 : i32
    %c0_i32_0 = arith.constant 0 : i32
    %c0_i32_1 = arith.constant 0 : i32
    return %c0_i32, %c0_i32_0 : i32, i32
  }
  func.func @transform_2(%arg0: i32, %arg1: i32) -> (i32, i32) {
    %c0_i32 = arith.constant 0 : i32
    %c0_i32_0 = arith.constant 0 : i32
    %c0_i32_1 = arith.constant 0 : i32
    return %c0_i32, %c0_i32_0 : i32, i32
  }
  func.func @transform_3(%arg0: i32, %arg1: i32) -> (i32, i32) {
    %c0_i32 = arith.constant 0 : i32
    %c0_i32_0 = arith.constant 0 : i32
    %c0_i32_1 = arith.constant 0 : i32
    return %c0_i32, %c0_i32_0 : i32, i32
  }
  func.func @transform_4(%arg0: i32, %arg1: i32) -> (i32, i32, i32) {
    %c0_i32 = arith.constant 0 : i32
    %c0_i32_0 = arith.constant 0 : i32
    return %arg1, %arg0, %c0_i32 : i32, i32, i32
  }
}

</mosaic_0001>

<bundles_post_ra>
// kernel: tpu_custom_call.1
= control target key start
LH: loop header
LB: loop body
LE: loop exit
PB: predicated region body
PF: predicated region fallthrough
CT: control target
= control target key end

     0   :  { %6 = vsyncpa [#allocation3], 0  ;;  %s124_s0 = inlined_call_operand.hbm [shape: f32[8,128], index: 0, kind: input, shape index: {}]   ;;  %s125_s1 = inlined_call_operand.hbm [shape: f32[8,128], index: 1, kind: output, shape index: {}]  }
   0x1   :  { %7 = vsyncpa [#allocation4], 0  ;;  %s88_s6 = smov [#allocation2]   ;;  %s40_s10 = scalar_lea.hbm %s124_s0, 128 }
   0x2   :  { %s14_s7 = sshll.u32 %s88_s6, 4  ;;  %p41_p0 = scmp.ne.s32.totalorder %s124_s0, %s40_s10  ;;  %s15_s7 = int_to_ptr.vmem [resolvable:$true] %s14_s7 }
   0x3   :  { %p44_p1 = scmp.lt.u32.totalorder %s40_s10, %s124_s0 }
   0x5   :  { %p46_p2 = pnand %p44_p1, %p41_p0 }
   0x7   :  { %49 = shalt.err (!%p46_p2)
}
   0x8   :  { %s50_s15 = scalar_lea.vmem %s15_s7, 128  ;;  %p55_p4 = scmp.lt.s32.totalorder %s15_s7, %s15_s7 }
   0x9   :  { %p51_p3 = scmp.ne.s32.totalorder %s15_s7, %s50_s15  ;;  %p56_p5 = scmp.lt.s32.totalorder %s50_s15, %s50_s15 }
   0xb   :  { %p57_p6 = por %p56_p5, %p55_p4 }
   0xd   :  { %p58_p7 = pnand %p57_p6, %p51_p3 }
   0xf   :  { %61 = shalt.err (!%p58_p7)
}
  0x10   :  { %17 = dma.hbm_to_vmem [thread:$0]  %s124_s0, 128, %s15_s7, [#allocation3]  }
  0x11   :  { %84 = dma.done.wait [#allocation3], 128  }
  0x12   :  { %85 = vsyncadd [#allocation3], 4294967168  ;;  %s89_s18 = smov [#allocation5]   ;;  %v21_v0 = vld [vmem:[#allocation2] sm:$0xff] }
  0x13   :  { %s29_s19 = sshll.u32 %s89_s18, 4  ;;  %22 = vst [vmem:[#allocation5] sm:$0xff] %v21_v0  ;;  %s30_s19 = int_to_ptr.vmem [resolvable:$true] %s29_s19 }
  0x14   :  { %s62_s20 = scalar_lea.vmem %s30_s19, 128  ;;  %p67_p9 = scmp.lt.s32.totalorder %s30_s19, %s30_s19 }
  0x15   :  { %p63_p8 = scmp.ne.s32.totalorder %s30_s19, %s62_s20  ;;  %p68_p10 = scmp.lt.s32.totalorder %s62_s20, %s62_s20 }
  0x17   :  { %p69_p11 = por %p68_p10, %p67_p9 }
  0x19   :  { %p70_p12 = pnand %p69_p11, %p63_p8 }
  0x1b   :  { %73 = shalt.err (!%p70_p12)
}
  0x1c   :  { %s74_s23 = scalar_lea.hbm %s125_s1, 128 }
  0x1d   :  { %p75_p13 = scmp.ne.s32.totalorder %s125_s1, %s74_s23  ;;  %p78_p0 = scmp.lt.u32.totalorder %s74_s23, %s125_s1 }
  0x1f   :  { %p80_p1 = pnand %p78_p0, %p75_p13 }
  0x21   :  { %83 = shalt.err (!%p80_p1)
}
  0x22   :  { %32 = dma.vmem_to_hbm [thread:$0]  %s30_s19, 128, %s125_s1, [#allocation4]  }
  0x23   :  { %86 = dma.done.wait [#allocation4], 128  }
  0x24   :  { %87 = vsyncadd [#allocation4], 4294967168 }
  0x25   :  { %36 = vsyncpa [#allocation3], 1 }
  0x26   :  { %37 = vsyncpa [#allocation4], 1 }

// kernel: tpu_custom_call.1
= control target key start
LH: loop header
LB: loop body
LE: loop exit
PB: predicated region body
PF: predicated region fallthrough
CT: control target
= control target key end

     0   :  { %9 = vsyncpa [#allocation5], 0  ;;  %s4214_s0 = inlined_call_operand.hbm [shape: f32[8,8,16], index: 0, kind: input, shape index: {}]   ;;  %s4215_s1 = inlined_call_operand.hbm [shape: f32[16,512], index: 1, kind: input, shape index: {}]   ;;  %s4216_s2 = inlined_call_operand.vmem [shape: f32[1,512], index: 2, kind: input, shape index: {}]   ;;  %s4217_s3 = inlined_call_operand.hbm [shape: f32[128,512], index: 3, kind: input, shape index: {}]   ;;  %s4218_s4 = inlined_call_operand.hbm [shape: f32[8,8,128], index: 4, kind: output, shape index: {}]  }
   0x1   :  { %10 = vsyncpa [#allocation8], 0 }
   0x2   :  { %11 = vsyncpa [#allocation6], 0  ;;  %s3643_s15 = smov [#allocation7]   ;;  %s3549_s19 = scalar_lea.hbm %s4215_s1, 1024 }
   0x3   :  { %s29_s16 = sshll.u32 %s3643_s15, 4  ;;  %p3550_p0 = scmp.ne.s32.totalorder %s4215_s1, %s3549_s19  ;;  %s30_s16 = int_to_ptr.vmem [resolvable:$true] %s29_s16 }
   0x4   :  { %p3553_p1 = scmp.lt.u32.totalorder %s3549_s19, %s4215_s1 }
   0x6   :  { %p3555_p2 = pnand %p3553_p1, %p3550_p0 }
   0x8   :  { %3558 = shalt.err (!%p3555_p2)
}
   0x9   :  { %s3559_s24 = scalar_lea.vmem %s30_s16, 1024  ;;  %p3564_p4 = scmp.lt.s32.totalorder %s30_s16, %s30_s16 }
   0xa   :  { %p3560_p3 = scmp.ne.s32.totalorder %s30_s16, %s3559_s24  ;;  %p3565_p5 = scmp.lt.s32.totalorder %s3559_s24, %s3559_s24 }
   0xc   :  { %p3566_p6 = por %p3565_p5, %p3564_p4 }
   0xe   :  { %p3567_p7 = pnand %p3566_p6, %p3560_p3 }
  0x10   :  { %3570 = shalt.err (!%p3567_p7)
}
  0x11   :  { %s3644_s25 = smov 512   ;;  %s3645_s26 = smov 32  }
  0x12   :  { %35 = dma.hbm_to_vmem [thread:$0]  %s4215_s1, 1024, %s30_s16, [#allocation8], %s3644_s25, %s3644_s25, %s3645_s26  }
  0x13   :  { %s3646_s29 = smov [#allocation4]   ;;  %s3571_s7 = scalar_lea.hbm %s4214_s0, 1024 }
  0x14   :  { %s17_s30 = sshll.u32 %s3646_s29, 4  ;;  %p3572_p8 = scmp.ne.s32.totalorder %s4214_s0, %s3571_s7  ;;  %s18_s30 = int_to_ptr.vmem [resolvable:$true] %s17_s30 }
  0x15   :  { %p3575_p9 = scmp.lt.u32.totalorder %s3571_s7, %s4214_s0 }
  0x17   :  { %p3577_p10 = pnand %p3575_p9, %p3572_p8 }
  0x19   :  { %3580 = shalt.err (!%p3577_p10)
}
  0x1a   :  { %s3581_s12 = scalar_lea.vmem %s18_s30, 1024  ;;  %p3586_p12 = scmp.lt.s32.totalorder %s18_s30, %s18_s30 }
  0x1b   :  { %p3582_p11 = scmp.ne.s32.totalorder %s18_s30, %s3581_s12  ;;  %p3587_p13 = scmp.lt.s32.totalorder %s3581_s12, %s3581_s12 }
  0x1d   :  { %p3588_p0 = por %p3587_p13, %p3586_p12 }
  0x1f   :  { %p3589_p1 = pnand %p3588_p0, %p3582_p11 }
  0x21   :  { %3592 = shalt.err (!%p3589_p1)
}
  0x22   :  { %s3647_s1 = smov 128   ;;  %s3648_s13 = smov 8  }
  0x23   :  { %23 = dma.hbm_to_vmem [thread:$0]  %s4214_s0, 1024, %s18_s30, [#allocation5], %s3647_s1, %s3647_s1, %s3648_s13  }
  0x24   :  { %s3649_s16 = smov [#allocation9]   ;;  %s3593_s20 = scalar_lea.hbm %s4217_s3, 8192 }
  0x25   :  { %s43_s17 = sshll.u32 %s3649_s16, 4  ;;  %p3594_p2 = scmp.ne.s32.totalorder %s4217_s3, %s3593_s20  ;;  %s44_s17 = int_to_ptr.vmem [resolvable:$true] %s43_s17 }
  0x26   :  { %p3597_p3 = scmp.lt.u32.totalorder %s3593_s20, %s4217_s3 }
  0x28   :  { %p3599_p4 = pnand %p3597_p3, %p3594_p2 }
  0x2a   :  { %3602 = shalt.err (!%p3599_p4)
}
  0x2b   :  { %s3603_s27 = scalar_lea.vmem %s44_s17, 8192  ;;  %p3608_p6 = scmp.lt.s32.totalorder %s44_s17, %s44_s17 }
  0x2c   :  { %p3604_p5 = scmp.ne.s32.totalorder %s44_s17, %s3603_s27  ;;  %p3609_p7 = scmp.lt.s32.totalorder %s3603_s27, %s3603_s27 }
  0x2e   :  { %p3610_p8 = por %p3609_p7, %p3608_p6 }
  0x30   :  { %p3611_p9 = pnand %p3610_p8, %p3604_p5 }
  0x32   :  { %3614 = shalt.err (!%p3611_p9)
}
  0x33   :  { %49 = dma.hbm_to_vmem [thread:$0]  %s4217_s3, 8192, %s44_s17, [#allocation8], %s3644_s25, %s3644_s25, %s3645_s26  }
  0x34   :  { %3637 = dma.done.wait [#allocation5], 1024  }
  0x35   :  { %3638 = vsyncadd [#allocation5], 4294966272 }
  0x36   :  { %3639 = dma.done.wait [#allocation8], 9216  }
  0x37   :  { %3640 = vsyncadd [#allocation8], 4294958080  ;;  %v3650_v0 = vmov 0.0   ;;  %v66_v1 = vld [vmem:[#allocation7 + $0x8] sm:$0xff]  ;;  %v68_v3 = vld [vmem:[#allocation7 + $0x18] sm:$0xff]  ;;  %vm162_vm0 = vcmask 130048  }
  0x38   :  { %230 = vmatprep.mubr.f32.mxu0 %v3650_v0  ;;  %301 = vmatprep.mubr.f32.mxu1 %v3650_v0  ;;  %v70_v2 = vld [vmem:[#allocation7 + $0x28] sm:$0xff]  ;;  %v72_v5 = vld [vmem:[#allocation7 + $0x38] sm:$0xff]  ;;  %v65_v6 = vld [vmem:[#allocation7] sm:$0xff] }
  0x39   :  { %v3724_v4 = vpack.c.bf16 %v70_v2, %v66_v1  ;;  %v69_v7 = vld [vmem:[#allocation7 + $0x20] sm:$0xff]  ;;  %v3726_v8 = vpack.c.bf16 %v72_v5, %v68_v3  ;;  %v67_v10 = vld [vmem:[#allocation7 + $0x10] sm:$0xff]  ;;  %v74_v12 = vld [vmem:[#allocation9 + $0x8] sm:$0xff] }
  0x3a   :  { %v3728_v9 = vpack.c.bf16 %v69_v7, %v65_v6  ;;  %v71_v11 = vld [vmem:[#allocation7 + $0x30] sm:$0xff]  ;;  %v78_v14 = vld [vmem:[#allocation9 + $0x28] sm:$0xff]  ;;  %v76_v15 = vld [vmem:[#allocation9 + $0x18] sm:$0xff] }
  0x3b   :  { %2773 = vmatprep.subr.bf16.mxu0 %v3724_v4  ;;  %v3731_v13 = vpack.c.bf16 %v71_v11, %v67_v10  ;;  %v80_v16 = vld [vmem:[#allocation9 + $0x38] sm:$0xff]  ;;  %2777 = vmatprep.subr.bf16.mxu1 %v3726_v8  ;;  %v3735_v17 = vpack.c.bf16 %v78_v14, %v74_v12  ;;  %v140_v19 = vld [vmem:[#allocation4] sm:$0xff]  ;;  %v75_v23 = vld [vmem:[#allocation9 + $0x10] sm:$0xff] }
  0x3c   :  { %2775 = vmatpush1.bf16.msra.mxu0 %v3728_v9  ;;  %v3737_v18 = vpack.c.bf16 %v80_v16, %v76_v15  ;;  %v73_v20 = vld [vmem:[#allocation9] sm:$0xff]  ;;  %v79_v24 = vld [vmem:[#allocation9 + $0x30] sm:$0xff]  ;;  %v82_v25 = vld [vmem:[#allocation9 + $0x48] sm:$0xff] }
  0x3d   :  { %v77_v21 = vld [vmem:[#allocation9 + $0x20] sm:$0xff]  ;;  %2779 = vmatpush1.bf16.msra.mxu1 %v3731_v13  ;;  %2781 = vmatprep.subr.bf16.mxu0 %v3735_v17  ;;  %v3744_v26 = vpack.c.bf16 %v79_v24, %v75_v23  ;;  %v86_v27 = vld [vmem:[#allocation9 + $0x68] sm:$0xff]  ;;  %v84_v28 = vld [vmem:[#allocation9 + $0x58] sm:$0xff] }
  0x3e   :  { %v3740_v22 = vpack.c.bf16 %v77_v21, %v73_v20  ;;  %2813 = vmatprep.subr.bf16.mxu1 %v3737_v18  ;;  %v88_v29 = vld [vmem:[#allocation9 + $0x78] sm:$0xff]  ;;  %v3747_v30 = vpack.c.bf16 %v86_v27, %v82_v25  ;;  %v81_v32 = vld [vmem:[#allocation9 + $0x40] sm:$0xff]  ;;  %v83_v34 = vld [vmem:[#allocation9 + $0x50] sm:$0xff] }
  0x3f   :  { %2732 = vmatmul.mubr.msk.f32.vlgmr.msra.gmra.mrb[0].mxu0 %vm162_vm0, %v140_v19  ;;  %v3749_v31 = vpack.c.bf16 %v88_v29, %v84_v28  ;;  %v85_v33 = vld [vmem:[#allocation9 + $0x60] sm:$0xff]  ;;  %v87_v36 = vld [vmem:[#allocation9 + $0x70] sm:$0xff]  ;;  %v90_v37 = vld [vmem:[#allocation9 + $0x88] sm:$0xff] }
  0x40   :  { %2733 = vmatmul.mubr.msk.f32.vlgmr.msra.gmra.mrb[0].mxu1 %vm162_vm0, %v140_v19  ;;  %2783 = vmatpush1.bf16.msra.mxu0 %v3740_v22  ;;  %v3753_v35 = vpack.c.bf16 %v85_v33, %v81_v32  ;;  %v94_v38 = vld [vmem:[#allocation9 + $0xa8] sm:$0xff]  ;;  %v3757_v39 = vpack.c.bf16 %v87_v36, %v83_v34  ;;  %v92_v41 = vld [vmem:[#allocation9 + $0x98] sm:$0xff]  ;;  %v89_v43 = vld [vmem:[#allocation9 + $0x80] sm:$0xff] }
  0x41   :  { %2815 = vmatpush1.bf16.msra.mxu1 %v3744_v26  ;;  %2785 = vmatprep.subr.bf16.mxu0 %v3747_v30  ;;  %v3759_v40 = vpack.c.bf16 %v94_v38, %v90_v37  ;;  %v96_v42 = vld [vmem:[#allocation9 + $0xb8] sm:$0xff]  ;;  %v93_v45 = vld [vmem:[#allocation9 + $0xa0] sm:$0xff]  ;;  %v91_v46 = vld [vmem:[#allocation9 + $0x90] sm:$0xff] }
  0x42   :  { %2817 = vmatprep.subr.bf16.mxu1 %v3749_v31  ;;  %v3762_v44 = vpack.c.bf16 %v96_v42, %v92_v41  ;;  %v95_v47 = vld [vmem:[#allocation9 + $0xb0] sm:$0xff]  ;;  %372 = vmatprep.mubr.f32.mxu0 %v3650_v0  ;;  %v98_v48 = vld [vmem:[#allocation9 + $0xc8] sm:$0xff]  ;;  %v100_v50 = vld [vmem:[#allocation9 + $0xd8] sm:$0xff]  ;;  %v3767_v51 = vpack.c.bf16 %v93_v45, %v89_v43 }
  0x43   :  { %v102_v49 = vld [vmem:[#allocation9 + $0xe8] sm:$0xff]  ;;  %443 = vmatprep.mubr.f32.mxu1 %v3650_v0  ;;  %v104_v52 = vld [vmem:[#allocation9 + $0xf8] sm:$0xff]  ;;  %v3771_v53 = vpack.c.bf16 %v95_v47, %v91_v46  ;;  %v97_v55 = vld [vmem:[#allocation9 + $0xc0] sm:$0xff] }
  0x44   :  { %2787 = vmatpush1.bf16.msra.mxu0 %v3753_v35  ;;  %v3773_v54 = vpack.c.bf16 %v102_v49, %v98_v48  ;;  %v101_v56 = vld [vmem:[#allocation9 + $0xe0] sm:$0xff]  ;;  %v99_v57 = vld [vmem:[#allocation9 + $0xd0] sm:$0xff]  ;;  %v3776_v58 = vpack.c.bf16 %v104_v52, %v100_v50  ;;  %v106_v60 = vld [vmem:[#allocation9 + $0x108] sm:$0xff] }
  0x45   :  { %2819 = vmatpush1.bf16.msra.mxu1 %v3757_v39  ;;  %2789 = vmatprep.subr.bf16.mxu0 %v3759_v40  ;;  %v103_v59 = vld [vmem:[#allocation9 + $0xf0] sm:$0xff]  ;;  %v110_v61 = vld [vmem:[#allocation9 + $0x128] sm:$0xff]  ;;  %v108_v62 = vld [vmem:[#allocation9 + $0x118] sm:$0xff]  ;;  %v3779_v1 = vpack.c.bf16 %v101_v56, %v97_v55 }
  0x46   :  { %2821 = vmatprep.subr.bf16.mxu1 %v3762_v44  ;;  %v112_v63 = vld [vmem:[#allocation9 + $0x138] sm:$0xff]  ;;  %v3783_v2 = vpack.c.bf16 %v103_v59, %v99_v57  ;;  %v3785_v3 = vpack.c.bf16 %v110_v61, %v106_v60  ;;  %v105_v5 = vld [vmem:[#allocation9 + $0x100] sm:$0xff]  ;;  %v107_v7 = vld [vmem:[#allocation9 + $0x110] sm:$0xff] }
  0x47   :  { %v109_v6 = vld [vmem:[#allocation9 + $0x120] sm:$0xff]  ;;  %v3788_v10 = vpack.c.bf16 %v112_v63, %v108_v62  ;;  %v111_v11 = vld [vmem:[#allocation9 + $0x130] sm:$0xff]  ;;  %v114_v12 = vld [vmem:[#allocation9 + $0x148] sm:$0xff] }
  0x48   :  { %2791 = vmatpush1.bf16.msra.mxu0 %v3767_v51  ;;  %v118_v14 = vld [vmem:[#allocation9 + $0x168] sm:$0xff]  ;;  %v116_v15 = vld [vmem:[#allocation9 + $0x158] sm:$0xff]  ;;  %v3791_v19 = vpack.c.bf16 %v109_v6, %v105_v5  ;;  %v3795_v20 = vpack.c.bf16 %v111_v11, %v107_v7  ;;  %v113_v23 = vld [vmem:[#allocation9 + $0x140] sm:$0xff]  ;;  %v142_v7 = vlaneseq }
  0x49   :  { %2823 = vmatpush1.bf16.msra.mxu1 %v3771_v53  ;;  %2793 = vmatprep.subr.bf16.mxu0 %v3773_v54  ;;  %v120_v16 = vld [vmem:[#allocation9 + $0x178] sm:$0xff]  ;;  %v3797_v21 = vpack.c.bf16 %v118_v14, %v114_v12  ;;  %v117_v24 = vld [vmem:[#allocation9 + $0x160] sm:$0xff]  ;;  %v115_v25 = vld [vmem:[#allocation9 + $0x150] sm:$0xff] }
  0x4a   :  { %2825 = vmatprep.subr.bf16.mxu1 %v3776_v58  ;;  %v3800_v27 = vpack.c.bf16 %v120_v16, %v116_v15  ;;  %v119_v28 = vld [vmem:[#allocation9 + $0x170] sm:$0xff]  ;;  %v122_v29 = vld [vmem:[#allocation9 + $0x188] sm:$0xff]  ;;  %v124_v33 = vld [vmem:[#allocation9 + $0x198] sm:$0xff]  ;;  %v3803_v36 = vpack.c.bf16 %v117_v24, %v113_v23  ;;  %v143_v11 = vshrl.u32 %v142_v7, 7 }
  0x4b   :  { %v126_v32 = vld [vmem:[#allocation9 + $0x1a8] sm:$0xff]  ;;  %v128_v34 = vld [vmem:[#allocation9 + $0x1b8] sm:$0xff]  ;;  %v3807_v37 = vpack.c.bf16 %v119_v28, %v115_v25  ;;  %v121_v41 = vld [vmem:[#allocation9 + $0x180] sm:$0xff] }
  0x4c   :  { %2795 = vmatpush1.bf16.msra.mxu0 %v3779_v1  ;;  %v3809_v38 = vpack.c.bf16 %v126_v32, %v122_v29  ;;  %v125_v42 = vld [vmem:[#allocation9 + $0x1a0] sm:$0xff]  ;;  %v123_v43 = vld [vmem:[#allocation9 + $0x190] sm:$0xff]  ;;  %v3812_v45 = vpack.c.bf16 %v128_v34, %v124_v33  ;;  %v130_v47 = vld [vmem:[#allocation9 + $0x1c8] sm:$0xff]  ;;  %v144_v12 = vsub.s32 0, %v143_v11  ;;  %v148_v15 = vsub.s32 1, %v143_v11 }
  0x4d   :  { %2827 = vmatpush1.bf16.msra.mxu1 %v3783_v2  ;;  %2797 = vmatprep.subr.bf16.mxu0 %v3785_v3  ;;  %v127_v46 = vld [vmem:[#allocation9 + $0x1b0] sm:$0xff]  ;;  %v134_v48 = vld [vmem:[#allocation9 + $0x1e8] sm:$0xff]  ;;  %v132_v49 = vld [vmem:[#allocation9 + $0x1d8] sm:$0xff]  ;;  %v3815_v52 = vpack.c.bf16 %v125_v42, %v121_v41  ;;  %v156_v25 = vsub.s32 3, %v143_v11 }
  0x4e   :  { %2829 = vmatprep.subr.bf16.mxu1 %v3788_v10  ;;  %v136_v50 = vld [vmem:[#allocation9 + $0x1f8] sm:$0xff]  ;;  %v3819_v55 = vpack.c.bf16 %v127_v46, %v123_v43  ;;  %v3821_v56 = vpack.c.bf16 %v134_v48, %v130_v47  ;;  %v129_v57 = vld [vmem:[#allocation9 + $0x1c0] sm:$0xff]  ;;  %v131_v61 = vld [vmem:[#allocation9 + $0x1d0] sm:$0xff]  ;;  %v152_v46 = vsub.s32 2, %v143_v11 }
  0x4f   :  { %v133_v59 = vld [vmem:[#allocation9 + $0x1e0] sm:$0xff]  ;;  %v3824_v60 = vpack.c.bf16 %v136_v50, %v132_v49  ;;  %v135_v62 = vld [vmem:[#allocation9 + $0x1f0] sm:$0xff]  ;;  %v480_v6 = vld [vmem:[#allocation4 + $0x8] sm:$0xff] }
  0x50   :  { %2799 = vmatpush1.bf16.msra.mxu0 %v3791_v19  ;;  %v3827_v63 = vpack.c.bf16 %v133_v59, %v129_v57  ;;  %v3831_v5 = vpack.c.bf16 %v135_v62, %v131_v61  ;;  %v137_v14 = vld [vmem:[%s4216_s2] sm:$0xf]  ;;  %s3651_s2 = smov [#allocation10]  }
  0x51   :  { %2831 = vmatpush1.bf16.msra.mxu1 %v3795_v20  ;;  %2801 = vmatprep.subr.bf16.mxu0 %v3797_v21  ;;  %v3885_v16 = vrot.slane %v137_v14, %v144_v12  ;;  %v3887_v23 = vrot.slane %v137_v14, %v148_v15  ;;  %v3891_v43 = vrot.slane %v137_v14, %v156_v25  ;;  %s2719_s26 = sshll.u32 %s3651_s2, 4  ;;  %s2720_s26 = int_to_ptr.vmem [resolvable:$true] %s2719_s26 }
  0x52   :  { %2833 = vmatprep.subr.bf16.mxu1 %v3800_v27  ;;  %v3894_v48 = vrot.slane %v137_v14, %v152_v46  ;;  %s3615_s29 = scalar_lea.vmem %s2720_s26, 1024  ;;  %p3620_p11 = scmp.lt.s32.totalorder %s2720_s26, %s2720_s26 }
  0x53   :  { %p3616_p10 = scmp.ne.s32.totalorder %s2720_s26, %s3615_s29  ;;  %p3621_p12 = scmp.lt.s32.totalorder %s3615_s29, %s3615_s29 }
  0x54   :  { %2803 = vmatpush1.bf16.msra.mxu0 %v3803_v36 }
  0x55   :  { %2835 = vmatpush1.bf16.msra.mxu1 %v3807_v37  ;;  %2805 = vmatprep.subr.bf16.mxu0 %v3809_v38  ;;  %p3622_p13 = por %p3621_p12, %p3620_p11 }
  0x56   :  { %2837 = vmatprep.subr.bf16.mxu1 %v3812_v45 }
  0x57   :  { %p3623_p0 = pnand %p3622_p13, %p3616_p10 }
  0x58   :  { %2807 = vmatpush1.bf16.msra.mxu0 %v3815_v52 }
  0x59   :  { %2839 = vmatpush1.bf16.msra.mxu1 %v3819_v55  ;;  %2809 = vmatprep.subr.bf16.mxu0 %v3821_v56 }
  0x5a   :  { %2841 = vmatprep.subr.bf16.mxu1 %v3824_v60 }
  0x5c   :  { %2811 = vmatpush1.bf16.msra.mxu0 %v3827_v63 }
  0x5d   :  { %2843 = vmatpush1.bf16.msra.mxu1 %v3831_v5  ;;  %2845 = vmatprep.subr.bf16.mxu0 %v3724_v4 }
  0x5e   :  { %2849 = vmatprep.subr.bf16.mxu1 %v3726_v8 }
  0x5f   :  { %373 = vmatmul.mubr.f32.vlgmr.msra.gmra.mrb[0].mxu0 %v3650_v0 }
  0x60   :  { %444 = vmatmul.mubr.f32.vlgmr.msra.gmra.mrb[0].mxu1 %v3650_v0  ;;  %2847 = vmatpush1.bf16.msra.mxu0 %v3728_v9 }
  0x61   :  { %2851 = vmatpush1.bf16.msra.mxu1 %v3731_v13  ;;  %548 = vmatprep.mubr.f32.mxu0 %v3650_v0 }
  0x62   :  { %619 = vmatprep.mubr.f32.mxu1 %v3650_v0  ;;  %2853 = vmatprep.subr.bf16.mxu0 %v3735_v17 }
  0x63   :  { %2885 = vmatprep.subr.bf16.mxu1 %v3737_v18  ;;  %2737 = vmatmul.mubr.msk.f32.vlgmr.msra.gmra.mrb[2].mxu0 %vm162_vm0, %v480_v6 }
  0x64   :  { %2738 = vmatmul.mubr.msk.f32.vlgmr.msra.gmra.mrb[2].mxu1 %vm162_vm0, %v480_v6  ;;  %2855 = vmatpush1.bf16.msra.mxu0 %v3740_v22 }
  0x65   :  { %2887 = vmatpush1.bf16.msra.mxu1 %v3744_v26  ;;  %2857 = vmatprep.subr.bf16.mxu0 %v3747_v30 }
  0x66   :  { %2889 = vmatprep.subr.bf16.mxu1 %v3749_v31  ;;  %690 = vmatprep.mubr.f32.mxu0 %v3650_v0 }
  0x67   :  { %761 = vmatprep.mubr.f32.mxu1 %v3650_v0 }
  0x68   :  { %2859 = vmatpush1.bf16.msra.mxu0 %v3753_v35 }
  0x69   :  { %2891 = vmatpush1.bf16.msra.mxu1 %v3757_v39  ;;  %2861 = vmatprep.subr.bf16.mxu0 %v3759_v40 }
  0x6a   :  { %2893 = vmatprep.subr.bf16.mxu1 %v3762_v44 }
  0x6c   :  { %2863 = vmatpush1.bf16.msra.mxu0 %v3767_v51 }
  0x6d   :  { %2895 = vmatpush1.bf16.msra.mxu1 %v3771_v53  ;;  %2865 = vmatprep.subr.bf16.mxu0 %v3773_v54 }
  0x6e   :  { %2897 = vmatprep.subr.bf16.mxu1 %v3776_v58 }
  0x70   :  { %2867 = vmatpush1.bf16.msra.mxu0 %v3779_v1 }
  0x71   :  { %2899 = vmatpush1.bf16.msra.mxu1 %v3783_v2  ;;  %2869 = vmatprep.subr.bf16.mxu0 %v3785_v3 }
  0x72   :  { %2901 = vmatprep.subr.bf16.mxu1 %v3788_v10 }
  0x74   :  { %2871 = vmatpush1.bf16.msra.mxu0 %v3791_v19 }
  0x75   :  { %2903 = vmatpush1.bf16.msra.mxu1 %v3795_v20  ;;  %2873 = vmatprep.subr.bf16.mxu0 %v3797_v21 }
  0x76   :  { %2905 = vmatprep.subr.bf16.mxu1 %v3800_v27 }
  0x78   :  { %2875 = vmatpush1.bf16.msra.mxu0 %v3803_v36 }
  0x79   :  { %2907 = vmatpush1.bf16.msra.mxu1 %v3807_v37  ;;  %2877 = vmatprep.subr.bf16.mxu0 %v3809_v38 }
  0x7a   :  { %2909 = vmatprep.subr.bf16.mxu1 %v3812_v45 }
  0x7c   :  { %2879 = vmatpush1.bf16.msra.mxu0 %v3815_v52 }
  0x7d   :  { %2911 = vmatpush1.bf16.msra.mxu1 %v3819_v55  ;;  %2881 = vmatprep.subr.bf16.mxu0 %v3821_v56 }
  0x7e   :  { %2913 = vmatprep.subr.bf16.mxu1 %v3824_v60 }
  0x80   :  { %2883 = vmatpush1.bf16.msra.mxu0 %v3827_v63 }
  0x81   :  { %2915 = vmatpush1.bf16.msra.mxu1 %v3831_v5  ;;  %2917 = vmatprep.subr.bf16.mxu0 %v3724_v4 }
  0x82   :  { %2921 = vmatprep.subr.bf16.mxu1 %v3726_v8 }
 0x132   :  { %v374_v24 = vpop.f32.mrb[0].mxu0 }
 0x133   :  { %v3348_v28 = vadd.f32 %v374_v24, %v3885_v16  ;;  %v445_v29 = vpop.f32.mrb[0].mxu1  ;;  %v376_v32 = vpop.f32.mrb[1].mxu0 }
 0x134   :  { %v3349_v33 = vadd.f32 %v376_v32, %v3887_v23  ;;  %v447_v34 = vpop.f32.mrb[1].mxu1  ;;  %v3350_v50 = vadd.f32 %v445_v29, %v3894_v48 }
 0x135   :  { %v2734_v41 = vmul.f32 -1.442695, %v3348_v28  ;;  %v3351_v47 = vadd.f32 %v447_v34, %v3891_v43 }
 0x136   :  { %v2735_v42 = vmul.f32 -1.442695, %v3349_v33  ;;  %v799_v33 = vld [vmem:[#allocation4 + $0x10] sm:$0xff] }
 0x137   :  { %3421 = vpow2.f32 %v2734_v41  ;;  %v2736_v49 = vmul.f32 -1.442695, %v3351_v47 }
 0x138   :  { %3423 = vpow2.f32 %v2735_v42 }
 0x139   :  { %3425 = vpow2.f32 %v2736_v49 }
 0x13a   :  { %3427 = vtanh.f32 %v3350_v50 }
 0x141   :  { %v3422_v57 = vpop.eup %3421 }
 0x142   :  { %v3424_v59 = vpop.eup %3423  ;;  %v457_v61 = vadd.f32 1.0, %v3422_v57 }
 0x143   :  { %v463_v62 = vadd.f32 1.0, %v3424_v59  ;;  %v3426_v6 = vpop.eup %3425 }
 0x144   :  { %3429 = vrcp.f32 %v457_v61  ;;  %v3428_v7 = vpop.eup %3427  ;;  %v470_v24 = vadd.f32 1.0, %v3426_v6 }
 0x145   :  { %3431 = vrcp.f32 %v463_v62 }
 0x146   :  { %3433 = vrcp.f32 %v470_v24 }
 0x14e   :  { %v3430_v12 = vpop.eup %3429 }
 0x14f   :  { %v3432_v11 = vpop.eup %3431  ;;  %v474_v15 = vmul.f32 %v3430_v12, %v3428_v7 }
 0x150   :  { %v473_v25 = vmul.f32 0.0, %v3432_v11  ;;  %v3434_v28 = vpop.eup %3433 }
 0x152   :  { %v3897_v14 = vadd.f32 %v474_v15, %v473_v25 }
 0x154   :  { %3435 = vtanh.f32 %v3897_v14 }
 0x15e   :  { %v3436_v29 = vpop.eup %3435 }
 0x15f   :  { %v477_v32 = vmul.f32 %v3436_v29, %v3434_v28 }
 0x161   :  { %478 = vst [vmem:[#allocation10] sm:$0xff] %v477_v32  ;;  %691 = vmatmul.mubr.f32.vlgmr.msra.gmra.mrb[2].mxu0 %v477_v32  ;;  %762 = vmatmul.mubr.f32.vlgmr.msra.gmra.mrb[2].mxu1 %v477_v32 }
 0x162   :  { %2919 = vmatpush1.bf16.msra.mxu0 %v3728_v9  ;;  %2923 = vmatpush1.bf16.msra.mxu1 %v3731_v13 }
 0x163   :  { %867 = vmatprep.mubr.f32.mxu0 %v3650_v0  ;;  %938 = vmatprep.mubr.f32.mxu1 %v3650_v0 }
 0x164   :  { %2925 = vmatprep.subr.bf16.mxu0 %v3735_v17  ;;  %2957 = vmatprep.subr.bf16.mxu1 %v3737_v18 }
 0x165   :  { %2742 = vmatmul.mubr.msk.f32.vlgmr.msra.gmra.mrb[4].mxu0 %vm162_vm0, %v799_v33  ;;  %2743 = vmatmul.mubr.msk.f32.vlgmr.msra.gmra.mrb[4].mxu1 %vm162_vm0, %v799_v33 }
 0x166   :  { %2927 = vmatpush1.bf16.msra.mxu0 %v3740_v22  ;;  %2959 = vmatpush1.bf16.msra.mxu1 %v3744_v26 }
 0x167   :  { %2929 = vmatprep.subr.bf16.mxu0 %v3747_v30  ;;  %2961 = vmatprep.subr.bf16.mxu1 %v3749_v31 }
 0x168   :  { %1009 = vmatprep.mubr.f32.mxu0 %v3650_v0  ;;  %1080 = vmatprep.mubr.f32.mxu1 %v3650_v0 }
 0x16a   :  { %2931 = vmatpush1.bf16.msra.mxu0 %v3753_v35  ;;  %2963 = vmatpush1.bf16.msra.mxu1 %v3757_v39 }
 0x16b   :  { %2933 = vmatprep.subr.bf16.mxu0 %v3759_v40  ;;  %2965 = vmatprep.subr.bf16.mxu1 %v3762_v44 }
 0x16e   :  { %2935 = vmatpush1.bf16.msra.mxu0 %v3767_v51  ;;  %2967 = vmatpush1.bf16.msra.mxu1 %v3771_v53 }
 0x16f   :  { %2937 = vmatprep.subr.bf16.mxu0 %v3773_v54  ;;  %2969 = vmatprep.subr.bf16.mxu1 %v3776_v58 }
 0x172   :  { %2939 = vmatpush1.bf16.msra.mxu0 %v3779_v1  ;;  %2971 = vmatpush1.bf16.msra.mxu1 %v3783_v2 }
 0x173   :  { %2941 = vmatprep.subr.bf16.mxu0 %v3785_v3  ;;  %2973 = vmatprep.subr.bf16.mxu1 %v3788_v10 }
 0x176   :  { %2943 = vmatpush1.bf16.msra.mxu0 %v3791_v19  ;;  %2975 = vmatpush1.bf16.msra.mxu1 %v3795_v20 }
 0x177   :  { %2945 = vmatprep.subr.bf16.mxu0 %v3797_v21  ;;  %2977 = vmatprep.subr.bf16.mxu1 %v3800_v27 }
 0x17a   :  { %2947 = vmatpush1.bf16.msra.mxu0 %v3803_v36  ;;  %2979 = vmatpush1.bf16.msra.mxu1 %v3807_v37 }
 0x17b   :  { %2949 = vmatprep.subr.bf16.mxu0 %v3809_v38  ;;  %2981 = vmatprep.subr.bf16.mxu1 %v3812_v45 }
 0x17e   :  { %2951 = vmatpush1.bf16.msra.mxu0 %v3815_v52  ;;  %2983 = vmatpush1.bf16.msra.mxu1 %v3819_v55 }
 0x17f   :  { %2953 = vmatprep.subr.bf16.mxu0 %v3821_v56  ;;  %2985 = vmatprep.subr.bf16.mxu1 %v3824_v60 }
 0x182   :  { %2955 = vmatpush1.bf16.msra.mxu0 %v3827_v63  ;;  %2987 = vmatpush1.bf16.msra.mxu1 %v3831_v5 }
 0x183   :  { %2989 = vmatprep.subr.bf16.mxu0 %v3724_v4  ;;  %2993 = vmatprep.subr.bf16.mxu1 %v3726_v8 }
 0x234   :  { %v692_v34 = vpop.f32.mrb[2].mxu0  ;;  %v763_v41 = vpop.f32.mrb[2].mxu1 }
 0x235   :  { %v3352_v42 = vadd.f32 %v692_v34, %v3885_v16  ;;  %v694_v46 = vpop.f32.mrb[3].mxu0  ;;  %v765_v47 = vpop.f32.mrb[3].mxu1  ;;  %v3354_v62 = vadd.f32 %v763_v41, %v3894_v48 }
 0x236   :  { %v3353_v49 = vadd.f32 %v694_v46, %v3887_v23  ;;  %v3355_v59 = vadd.f32 %v765_v47, %v3891_v43 }
 0x237   :  { %v2739_v50 = vmul.f32 -1.442695, %v3352_v42 }
 0x238   :  { %v2740_v57 = vmul.f32 -1.442695, %v3353_v49  ;;  %v2741_v61 = vmul.f32 -1.442695, %v3355_v59 }
 0x239   :  { %3437 = vpow2.f32 %v2739_v50 }
 0x23a   :  { %3439 = vpow2.f32 %v2740_v57 }
 0x23b   :  { %3441 = vpow2.f32 %v2741_v61 }
 0x23c   :  { %3443 = vtanh.f32 %v3354_v62 }
 0x243   :  { %v3438_v6 = vpop.eup %3437 }
 0x244   :  { %v3440_v7 = vpop.eup %3439  ;;  %v775_v12 = vadd.f32 1.0, %v3438_v6 }
 0x245   :  { %v781_v11 = vadd.f32 1.0, %v3440_v7  ;;  %v3442_v15 = vpop.eup %3441 }
 0x246   :  { %3445 = vrcp.f32 %v775_v12  ;;  %v3444_v24 = vpop.eup %3443  ;;  %v788_v32 = vadd.f32 1.0, %v3442_v15 }
 0x247   :  { %3447 = vrcp.f32 %v781_v11 }
 0x248   :  { %3449 = vrcp.f32 %v788_v32 }
 0x250   :  { %v3446_v25 = vpop.eup %3445 }
 0x251   :  { %v3448_v28 = vpop.eup %3447  ;;  %v792_v29 = vmul.f32 %v3446_v25, %v3444_v24 }
 0x252   :  { %v791_v33 = vmul.f32 %v3448_v28, %v3897_v14  ;;  %v3450_v41 = vpop.eup %3449  ;;  %v1118_v14 = vld [vmem:[#allocation4 + $0x18] sm:$0xff] }
 0x254   :  { %v3947_v34 = vadd.f32 %v792_v29, %v791_v33 }
 0x256   :  { %3451 = vtanh.f32 %v3947_v34 }
 0x260   :  { %v3452_v42 = vpop.eup %3451 }
 0x261   :  { %v795_v46 = vmul.f32 %v3452_v42, %v3450_v41 }
 0x263   :  { %797 = vst [vmem:[#allocation10 + $0x8] sm:$0xff] %v795_v46  ;;  %1010 = vmatmul.mubr.f32.vlgmr.msra.gmra.mrb[4].mxu0 %v795_v46  ;;  %1081 = vmatmul.mubr.f32.vlgmr.msra.gmra.mrb[4].mxu1 %v795_v46 }
 0x264   :  { %2991 = vmatpush1.bf16.msra.mxu0 %v3728_v9  ;;  %2995 = vmatpush1.bf16.msra.mxu1 %v3731_v13 }
 0x265   :  { %1186 = vmatprep.mubr.f32.mxu0 %v3650_v0  ;;  %1257 = vmatprep.mubr.f32.mxu1 %v3650_v0 }
 0x266   :  { %2997 = vmatprep.subr.bf16.mxu0 %v3735_v17  ;;  %3029 = vmatprep.subr.bf16.mxu1 %v3737_v18 }
 0x267   :  { %2747 = vmatmul.mubr.msk.f32.vlgmr.msra.gmra.mrb[6].mxu0 %vm162_vm0, %v1118_v14  ;;  %2748 = vmatmul.mubr.msk.f32.vlgmr.msra.gmra.mrb[6].mxu1 %vm162_vm0, %v1118_v14 }
 0x268   :  { %2999 = vmatpush1.bf16.msra.mxu0 %v3740_v22  ;;  %3031 = vmatpush1.bf16.msra.mxu1 %v3744_v26 }
 0x269   :  { %3001 = vmatprep.subr.bf16.mxu0 %v3747_v30  ;;  %3033 = vmatprep.subr.bf16.mxu1 %v3749_v31 }
 0x26a   :  { %1328 = vmatprep.mubr.f32.mxu0 %v3650_v0  ;;  %1399 = vmatprep.mubr.f32.mxu1 %v3650_v0 }
 0x26c   :  { %3003 = vmatpush1.bf16.msra.mxu0 %v3753_v35  ;;  %3035 = vmatpush1.bf16.msra.mxu1 %v3757_v39 }
 0x26d   :  { %3005 = vmatprep.subr.bf16.mxu0 %v3759_v40  ;;  %3037 = vmatprep.subr.bf16.mxu1 %v3762_v44 }
 0x270   :  { %3007 = vmatpush1.bf16.msra.mxu0 %v3767_v51  ;;  %3039 = vmatpush1.bf16.msra.mxu1 %v3771_v53 }
 0x271   :  { %3009 = vmatprep.subr.bf16.mxu0 %v3773_v54  ;;  %3041 = vmatprep.subr.bf16.mxu1 %v3776_v58 }
 0x274   :  { %3011 = vmatpush1.bf16.msra.mxu0 %v3779_v1  ;;  %3043 = vmatpush1.bf16.msra.mxu1 %v3783_v2 }
 0x275   :  { %3013 = vmatprep.subr.bf16.mxu0 %v3785_v3  ;;  %3045 = vmatprep.subr.bf16.mxu1 %v3788_v10 }
 0x278   :  { %3015 = vmatpush1.bf16.msra.mxu0 %v3791_v19  ;;  %3047 = vmatpush1.bf16.msra.mxu1 %v3795_v20 }
 0x279   :  { %3017 = vmatprep.subr.bf16.mxu0 %v3797_v21  ;;  %3049 = vmatprep.subr.bf16.mxu1 %v3800_v27 }
 0x27c   :  { %3019 = vmatpush1.bf16.msra.mxu0 %v3803_v36  ;;  %3051 = vmatpush1.bf16.msra.mxu1 %v3807_v37 }
 0x27d   :  { %3021 = vmatprep.subr.bf16.mxu0 %v3809_v38  ;;  %3053 = vmatprep.subr.bf16.mxu1 %v3812_v45 }
 0x280   :  { %3023 = vmatpush1.bf16.msra.mxu0 %v3815_v52  ;;  %3055 = vmatpush1.bf16.msra.mxu1 %v3819_v55 }
 0x281   :  { %3025 = vmatprep.subr.bf16.mxu0 %v3821_v56  ;;  %3057 = vmatprep.subr.bf16.mxu1 %v3824_v60 }
 0x284   :  { %3027 = vmatpush1.bf16.msra.mxu0 %v3827_v63  ;;  %3059 = vmatpush1.bf16.msra.mxu1 %v3831_v5 }
 0x285   :  { %3061 = vmatprep.subr.bf16.mxu0 %v3724_v4  ;;  %3065 = vmatprep.subr.bf16.mxu1 %v3726_v8 }
 0x336   :  { %v1011_v47 = vpop.f32.mrb[4].mxu0  ;;  %v1082_v49 = vpop.f32.mrb[4].mxu1 }
 0x337   :  { %v3356_v50 = vadd.f32 %v1011_v47, %v3885_v16  ;;  %v1013_v57 = vpop.f32.mrb[5].mxu0  ;;  %v1084_v59 = vpop.f32.mrb[5].mxu1  ;;  %v3358_v11 = vadd.f32 %v1082_v49, %v3894_v48 }
 0x338   :  { %v3357_v61 = vadd.f32 %v1013_v57, %v3887_v23  ;;  %v3359_v7 = vadd.f32 %v1084_v59, %v3891_v43 }
 0x339   :  { %v2744_v62 = vmul.f32 -1.442695, %v3356_v50 }
 0x33a   :  { %v2745_v6 = vmul.f32 -1.442695, %v3357_v61  ;;  %v2746_v12 = vmul.f32 -1.442695, %v3359_v7 }
 0x33b   :  { %3453 = vpow2.f32 %v2744_v62 }
 0x33c   :  { %3455 = vpow2.f32 %v2745_v6 }
 0x33d   :  { %3457 = vpow2.f32 %v2746_v12 }
 0x33e   :  { %3459 = vtanh.f32 %v3358_v11 }
 0x345   :  { %v3454_v15 = vpop.eup %3453 }
 0x346   :  { %v3456_v24 = vpop.eup %3455  ;;  %v1094_v25 = vadd.f32 1.0, %v3454_v15 }
 0x347   :  { %v1100_v28 = vadd.f32 1.0, %v3456_v24  ;;  %v3458_v29 = vpop.eup %3457 }
 0x348   :  { %3461 = vrcp.f32 %v1094_v25  ;;  %v3460_v32 = vpop.eup %3459  ;;  %v1107_v46 = vadd.f32 1.0, %v3458_v29 }
 0x349   :  { %3463 = vrcp.f32 %v1100_v28 }
 0x34a   :  { %3465 = vrcp.f32 %v1107_v46 }
 0x352   :  { %v3462_v33 = vpop.eup %3461 }
 0x353   :  { %v3464_v41 = vpop.eup %3463  ;;  %v1111_v42 = vmul.f32 %v3462_v33, %v3460_v32 }
 0x354   :  { %v1110_v14 = vmul.f32 %v3464_v41, %v3947_v34  ;;  %v3466_v49 = vpop.eup %3465  ;;  %v1437_v34 = vld [vmem:[#allocation4 + $0x20] sm:$0xff] }
 0x356   :  { %v3997_v47 = vadd.f32 %v1111_v42, %v1110_v14 }
 0x358   :  { %3467 = vtanh.f32 %v3997_v47 }
 0x362   :  { %v3468_v50 = vpop.eup %3467 }
 0x363   :  { %v1114_v57 = vmul.f32 %v3468_v50, %v3466_v49 }
 0x365   :  { %1116 = vst [vmem:[#allocation10 + $0x10] sm:$0xff] %v1114_v57  ;;  %1329 = vmatmul.mubr.f32.vlgmr.msra.gmra.mrb[6].mxu0 %v1114_v57  ;;  %1400 = vmatmul.mubr.f32.vlgmr.msra.gmra.mrb[6].mxu1 %v1114_v57 }
 0x366   :  { %3063 = vmatpush1.bf16.msra.mxu0 %v3728_v9  ;;  %3067 = vmatpush1.bf16.msra.mxu1 %v3731_v13 }
 0x367   :  { %1505 = vmatprep.mubr.f32.mxu0 %v3650_v0  ;;  %1576 = vmatprep.mubr.f32.mxu1 %v3650_v0 }
 0x368   :  { %3069 = vmatprep.subr.bf16.mxu0 %v3735_v17  ;;  %3101 = vmatprep.subr.bf16.mxu1 %v3737_v18 }
 0x369   :  { %2752 = vmatmul.mubr.msk.f32.vlgmr.msra.gmra.mrb[8].mxu0 %vm162_vm0, %v1437_v34  ;;  %2753 = vmatmul.mubr.msk.f32.vlgmr.msra.gmra.mrb[8].mxu1 %vm162_vm0, %v1437_v34 }
 0x36a   :  { %3071 = vmatpush1.bf16.msra.mxu0 %v3740_v22  ;;  %3103 = vmatpush1.bf16.msra.mxu1 %v3744_v26 }
 0x36b   :  { %3073 = vmatprep.subr.bf16.mxu0 %v3747_v30  ;;  %3105 = vmatprep.subr.bf16.mxu1 %v3749_v31 }
 0x36c   :  { %1647 = vmatprep.mubr.f32.mxu0 %v3650_v0  ;;  %1718 = vmatprep.mubr.f32.mxu1 %v3650_v0 }
 0x36e   :  { %3075 = vmatpush1.bf16.msra.mxu0 %v3753_v35  ;;  %3107 = vmatpush1.bf16.msra.mxu1 %v3757_v39 }
 0x36f   :  { %3077 = vmatprep.subr.bf16.mxu0 %v3759_v40  ;;  %3109 = vmatprep.subr.bf16.mxu1 %v3762_v44 }
 0x372   :  { %3079 = vmatpush1.bf16.msra.mxu0 %v3767_v51  ;;  %3111 = vmatpush1.bf16.msra.mxu1 %v3771_v53 }
 0x373   :  { %3081 = vmatprep.subr.bf16.mxu0 %v3773_v54  ;;  %3113 = vmatprep.subr.bf16.mxu1 %v3776_v58 }
 0x376   :  { %3083 = vmatpush1.bf16.msra.mxu0 %v3779_v1  ;;  %3115 = vmatpush1.bf16.msra.mxu1 %v3783_v2 }
 0x377   :  { %3085 = vmatprep.subr.bf16.mxu0 %v3785_v3  ;;  %3117 = vmatprep.subr.bf16.mxu1 %v3788_v10 }
 0x37a   :  { %3087 = vmatpush1.bf16.msra.mxu0 %v3791_v19  ;;  %3119 = vmatpush1.bf16.msra.mxu1 %v3795_v20 }
 0x37b   :  { %3089 = vmatprep.subr.bf16.mxu0 %v3797_v21  ;;  %3121 = vmatprep.subr.bf16.mxu1 %v3800_v27 }
 0x37e   :  { %3091 = vmatpush1.bf16.msra.mxu0 %v3803_v36  ;;  %3123 = vmatpush1.bf16.msra.mxu1 %v3807_v37 }
 0x37f   :  { %3093 = vmatprep.subr.bf16.mxu0 %v3809_v38  ;;  %3125 = vmatprep.subr.bf16.mxu1 %v3812_v45 }
 0x382   :  { %3095 = vmatpush1.bf16.msra.mxu0 %v3815_v52  ;;  %3127 = vmatpush1.bf16.msra.mxu1 %v3819_v55 }
 0x383   :  { %3097 = vmatprep.subr.bf16.mxu0 %v3821_v56  ;;  %3129 = vmatprep.subr.bf16.mxu1 %v3824_v60 }
 0x386   :  { %3099 = vmatpush1.bf16.msra.mxu0 %v3827_v63  ;;  %3131 = vmatpush1.bf16.msra.mxu1 %v3831_v5 }
 0x387   :  { %3133 = vmatprep.subr.bf16.mxu0 %v3724_v4  ;;  %3137 = vmatprep.subr.bf16.mxu1 %v3726_v8 }
 0x438   :  { %v1330_v59 = vpop.f32.mrb[6].mxu0  ;;  %v1401_v61 = vpop.f32.mrb[6].mxu1 }
 0x439   :  { %v3360_v62 = vadd.f32 %v1330_v59, %v3885_v16  ;;  %v1332_v6 = vpop.f32.mrb[7].mxu0  ;;  %v1403_v7 = vpop.f32.mrb[7].mxu1  ;;  %v3362_v28 = vadd.f32 %v1401_v61, %v3894_v48 }
 0x43a   :  { %v3361_v12 = vadd.f32 %v1332_v6, %v3887_v23  ;;  %v3363_v24 = vadd.f32 %v1403_v7, %v3891_v43 }
 0x43b   :  { %v2749_v11 = vmul.f32 -1.442695, %v3360_v62 }
 0x43c   :  { %v2750_v15 = vmul.f32 -1.442695, %v3361_v12  ;;  %v2751_v25 = vmul.f32 -1.442695, %v3363_v24 }
 0x43d   :  { %3469 = vpow2.f32 %v2749_v11 }
 0x43e   :  { %3471 = vpow2.f32 %v2750_v15 }
 0x43f   :  { %3473 = vpow2.f32 %v2751_v25 }
 0x440   :  { %3475 = vtanh.f32 %v3362_v28 }
 0x447   :  { %v3470_v29 = vpop.eup %3469 }
 0x448   :  { %v3472_v32 = vpop.eup %3471  ;;  %v1413_v33 = vadd.f32 1.0, %v3470_v29 }
 0x449   :  { %v1419_v41 = vadd.f32 1.0, %v3472_v32  ;;  %v3474_v42 = vpop.eup %3473 }
 0x44a   :  { %3477 = vrcp.f32 %v1413_v33  ;;  %v3476_v46 = vpop.eup %3475  ;;  %v1426_v57 = vadd.f32 1.0, %v3474_v42 }
 0x44b   :  { %3479 = vrcp.f32 %v1419_v41 }
 0x44c   :  { %3481 = vrcp.f32 %v1426_v57 }
 0x454   :  { %v3478_v14 = vpop.eup %3477 }
 0x455   :  { %v3480_v49 = vpop.eup %3479  ;;  %v1430_v50 = vmul.f32 %v3478_v14, %v3476_v46 }
 0x456   :  { %v1429_v34 = vmul.f32 %v3480_v49, %v3997_v47  ;;  %v3482_v61 = vpop.eup %3481  ;;  %v1756_v47 = vld [vmem:[#allocation4 + $0x28] sm:$0xff] }
 0x458   :  { %v4047_v59 = vadd.f32 %v1430_v50, %v1429_v34 }
 0x45a   :  { %3483 = vtanh.f32 %v4047_v59 }
 0x464   :  { %v3484_v62 = vpop.eup %3483 }
 0x465   :  { %v1433_v6 = vmul.f32 %v3484_v62, %v3482_v61 }
 0x467   :  { %1435 = vst [vmem:[#allocation10 + $0x18] sm:$0xff] %v1433_v6  ;;  %1648 = vmatmul.mubr.f32.vlgmr.msra.gmra.mrb[8].mxu0 %v1433_v6  ;;  %1719 = vmatmul.mubr.f32.vlgmr.msra.gmra.mrb[8].mxu1 %v1433_v6 }
 0x468   :  { %3135 = vmatpush1.bf16.msra.mxu0 %v3728_v9  ;;  %3139 = vmatpush1.bf16.msra.mxu1 %v3731_v13 }
 0x469   :  { %1824 = vmatprep.mubr.f32.mxu0 %v3650_v0  ;;  %1895 = vmatprep.mubr.f32.mxu1 %v3650_v0 }
 0x46a   :  { %3141 = vmatprep.subr.bf16.mxu0 %v3735_v17  ;;  %3173 = vmatprep.subr.bf16.mxu1 %v3737_v18 }
 0x46b   :  { %2757 = vmatmul.mubr.msk.f32.vlgmr.msra.gmra.mrb[10].mxu0 %vm162_vm0, %v1756_v47  ;;  %2758 = vmatmul.mubr.msk.f32.vlgmr.msra.gmra.mrb[10].mxu1 %vm162_vm0, %v1756_v47 }
 0x46c   :  { %3143 = vmatpush1.bf16.msra.mxu0 %v3740_v22  ;;  %3175 = vmatpush1.bf16.msra.mxu1 %v3744_v26 }
 0x46d   :  { %3145 = vmatprep.subr.bf16.mxu0 %v3747_v30  ;;  %3177 = vmatprep.subr.bf16.mxu1 %v3749_v31 }
 0x46e   :  { %1966 = vmatprep.mubr.f32.mxu0 %v3650_v0  ;;  %2037 = vmatprep.mubr.f32.mxu1 %v3650_v0 }
 0x470   :  { %3147 = vmatpush1.bf16.msra.mxu0 %v3753_v35  ;;  %3179 = vmatpush1.bf16.msra.mxu1 %v3757_v39 }
 0x471   :  { %3149 = vmatprep.subr.bf16.mxu0 %v3759_v40  ;;  %3181 = vmatprep.subr.bf16.mxu1 %v3762_v44 }
 0x474   :  { %3151 = vmatpush1.bf16.msra.mxu0 %v3767_v51  ;;  %3183 = vmatpush1.bf16.msra.mxu1 %v3771_v53 }
 0x475   :  { %3153 = vmatprep.subr.bf16.mxu0 %v3773_v54  ;;  %3185 = vmatprep.subr.bf16.mxu1 %v3776_v58 }
 0x478   :  { %3155 = vmatpush1.bf16.msra.mxu0 %v3779_v1  ;;  %3187 = vmatpush1.bf16.msra.mxu1 %v3783_v2 }
 0x479   :  { %3157 = vmatprep.subr.bf16.mxu0 %v3785_v3  ;;  %3189 = vmatprep.subr.bf16.mxu1 %v3788_v10 }
 0x47c   :  { %3159 = vmatpush1.bf16.msra.mxu0 %v3791_v19  ;;  %3191 = vmatpush1.bf16.msra.mxu1 %v3795_v20 }
 0x47d   :  { %3161 = vmatprep.subr.bf16.mxu0 %v3797_v21  ;;  %3193 = vmatprep.subr.bf16.mxu1 %v3800_v27 }
 0x480   :  { %3163 = vmatpush1.bf16.msra.mxu0 %v3803_v36  ;;  %3195 = vmatpush1.bf16.msra.mxu1 %v3807_v37 }
 0x481   :  { %3165 = vmatprep.subr.bf16.mxu0 %v3809_v38  ;;  %3197 = vmatprep.subr.bf16.mxu1 %v3812_v45 }
 0x484   :  { %3167 = vmatpush1.bf16.msra.mxu0 %v3815_v52  ;;  %3199 = vmatpush1.bf16.msra.mxu1 %v3819_v55 }
 0x485   :  { %3169 = vmatprep.subr.bf16.mxu0 %v3821_v56  ;;  %3201 = vmatprep.subr.bf16.mxu1 %v3824_v60 }
 0x488   :  { %3171 = vmatpush1.bf16.msra.mxu0 %v3827_v63  ;;  %3203 = vmatpush1.bf16.msra.mxu1 %v3831_v5 }
 0x489   :  { %3205 = vmatprep.subr.bf16.mxu0 %v3724_v4  ;;  %3209 = vmatprep.subr.bf16.mxu1 %v3726_v8 }
 0x53a   :  { %v1649_v7 = vpop.f32.mrb[8].mxu0  ;;  %v1720_v12 = vpop.f32.mrb[8].mxu1 }
 0x53b   :  { %v3364_v11 = vadd.f32 %v1649_v7, %v3885_v16  ;;  %v1651_v15 = vpop.f32.mrb[9].mxu0  ;;  %v1722_v24 = vpop.f32.mrb[9].mxu1  ;;  %v3366_v41 = vadd.f32 %v1720_v12, %v3894_v48 }
 0x53c   :  { %v3365_v25 = vadd.f32 %v1651_v15, %v3887_v23  ;;  %v3367_v32 = vadd.f32 %v1722_v24, %v3891_v43 }
 0x53d   :  { %v2754_v28 = vmul.f32 -1.442695, %v3364_v11 }
 0x53e   :  { %v2755_v29 = vmul.f32 -1.442695, %v3365_v25  ;;  %v2756_v33 = vmul.f32 -1.442695, %v3367_v32 }
 0x53f   :  { %3485 = vpow2.f32 %v2754_v28 }
 0x540   :  { %3487 = vpow2.f32 %v2755_v29 }
 0x541   :  { %3489 = vpow2.f32 %v2756_v33 }
 0x542   :  { %3491 = vtanh.f32 %v3366_v41 }
 0x549   :  { %v3486_v42 = vpop.eup %3485 }
 0x54a   :  { %v3488_v46 = vpop.eup %3487  ;;  %v1732_v14 = vadd.f32 1.0, %v3486_v42 }
 0x54b   :  { %v1738_v49 = vadd.f32 1.0, %v3488_v46  ;;  %v3490_v50 = vpop.eup %3489 }
 0x54c   :  { %3493 = vrcp.f32 %v1732_v14  ;;  %v3492_v57 = vpop.eup %3491  ;;  %v1745_v6 = vadd.f32 1.0, %v3490_v50 }
 0x54d   :  { %3495 = vrcp.f32 %v1738_v49 }
 0x54e   :  { %3497 = vrcp.f32 %v1745_v6 }
 0x556   :  { %v3494_v34 = vpop.eup %3493 }
 0x557   :  { %v3496_v61 = vpop.eup %3495  ;;  %v1749_v62 = vmul.f32 %v3494_v34, %v3492_v57 }
 0x558   :  { %v1748_v47 = vmul.f32 %v3496_v61, %v4047_v59  ;;  %v3498_v12 = vpop.eup %3497  ;;  %v2075_v59 = vld [vmem:[#allocation4 + $0x30] sm:$0xff] }
 0x55a   :  { %v4097_v7 = vadd.f32 %v1749_v62, %v1748_v47 }
 0x55c   :  { %3499 = vtanh.f32 %v4097_v7 }
 0x566   :  { %v3500_v11 = vpop.eup %3499 }
 0x567   :  { %v1752_v15 = vmul.f32 %v3500_v11, %v3498_v12 }
 0x569   :  { %1754 = vst [vmem:[#allocation10 + $0x20] sm:$0xff] %v1752_v15  ;;  %1967 = vmatmul.mubr.f32.vlgmr.msra.gmra.mrb[10].mxu0 %v1752_v15  ;;  %2038 = vmatmul.mubr.f32.vlgmr.msra.gmra.mrb[10].mxu1 %v1752_v15 }
 0x56a   :  { %3207 = vmatpush1.bf16.msra.mxu0 %v3728_v9  ;;  %3211 = vmatpush1.bf16.msra.mxu1 %v3731_v13 }
 0x56b   :  { %2143 = vmatprep.mubr.f32.mxu0 %v3650_v0  ;;  %2214 = vmatprep.mubr.f32.mxu1 %v3650_v0 }
 0x56c   :  { %3213 = vmatprep.subr.bf16.mxu0 %v3735_v17  ;;  %3245 = vmatprep.subr.bf16.mxu1 %v3737_v18 }
 0x56d   :  { %2762 = vmatmul.mubr.msk.f32.vlgmr.msra.gmra.mrb[12].mxu0 %vm162_vm0, %v2075_v59  ;;  %2763 = vmatmul.mubr.msk.f32.vlgmr.msra.gmra.mrb[12].mxu1 %vm162_vm0, %v2075_v59 }
 0x56e   :  { %3215 = vmatpush1.bf16.msra.mxu0 %v3740_v22  ;;  %3247 = vmatpush1.bf16.msra.mxu1 %v3744_v26 }
 0x56f   :  { %3217 = vmatprep.subr.bf16.mxu0 %v3747_v30  ;;  %3249 = vmatprep.subr.bf16.mxu1 %v3749_v31 }
 0x570   :  { %2285 = vmatprep.mubr.f32.mxu0 %v3650_v0  ;;  %2356 = vmatprep.mubr.f32.mxu1 %v3650_v0 }
 0x572   :  { %3219 = vmatpush1.bf16.msra.mxu0 %v3753_v35  ;;  %3251 = vmatpush1.bf16.msra.mxu1 %v3757_v39 }
 0x573   :  { %3221 = vmatprep.subr.bf16.mxu0 %v3759_v40  ;;  %3253 = vmatprep.subr.bf16.mxu1 %v3762_v44 }
 0x576   :  { %3223 = vmatpush1.bf16.msra.mxu0 %v3767_v51  ;;  %3255 = vmatpush1.bf16.msra.mxu1 %v3771_v53 }
 0x577   :  { %3225 = vmatprep.subr.bf16.mxu0 %v3773_v54  ;;  %3257 = vmatprep.subr.bf16.mxu1 %v3776_v58 }
 0x57a   :  { %3227 = vmatpush1.bf16.msra.mxu0 %v3779_v1  ;;  %3259 = vmatpush1.bf16.msra.mxu1 %v3783_v2 }
 0x57b   :  { %3229 = vmatprep.subr.bf16.mxu0 %v3785_v3  ;;  %3261 = vmatprep.subr.bf16.mxu1 %v3788_v10 }
 0x57e   :  { %3231 = vmatpush1.bf16.msra.mxu0 %v3791_v19  ;;  %3263 = vmatpush1.bf16.msra.mxu1 %v3795_v20 }
 0x57f   :  { %3233 = vmatprep.subr.bf16.mxu0 %v3797_v21  ;;  %3265 = vmatprep.subr.bf16.mxu1 %v3800_v27 }
 0x582   :  { %3235 = vmatpush1.bf16.msra.mxu0 %v3803_v36  ;;  %3267 = vmatpush1.bf16.msra.mxu1 %v3807_v37 }
 0x583   :  { %3237 = vmatprep.subr.bf16.mxu0 %v3809_v38  ;;  %3269 = vmatprep.subr.bf16.mxu1 %v3812_v45 }
 0x586   :  { %3239 = vmatpush1.bf16.msra.mxu0 %v3815_v52  ;;  %3271 = vmatpush1.bf16.msra.mxu1 %v3819_v55 }
 0x587   :  { %3241 = vmatprep.subr.bf16.mxu0 %v3821_v56  ;;  %3273 = vmatprep.subr.bf16.mxu1 %v3824_v60 }
 0x58a   :  { %3243 = vmatpush1.bf16.msra.mxu0 %v3827_v63  ;;  %3275 = vmatpush1.bf16.msra.mxu1 %v3831_v5 }
 0x58b   :  { %3277 = vmatprep.subr.bf16.mxu0 %v3724_v4  ;;  %3281 = vmatprep.subr.bf16.mxu1 %v3726_v8 }
 0x63c   :  { %v1968_v24 = vpop.f32.mrb[10].mxu0  ;;  %v2039_v25 = vpop.f32.mrb[10].mxu1 }
 0x63d   :  { %v3368_v28 = vadd.f32 %v1968_v24, %v3885_v16  ;;  %v1970_v29 = vpop.f32.mrb[11].mxu0  ;;  %v2041_v32 = vpop.f32.mrb[11].mxu1  ;;  %v3370_v49 = vadd.f32 %v2039_v25, %v3894_v48 }
 0x63e   :  { %v3369_v33 = vadd.f32 %v1970_v29, %v3887_v23  ;;  %v3371_v46 = vadd.f32 %v2041_v32, %v3891_v43 }
 0x63f   :  { %v2759_v41 = vmul.f32 -1.442695, %v3368_v28 }
 0x640   :  { %v2760_v42 = vmul.f32 -1.442695, %v3369_v33  ;;  %v2761_v14 = vmul.f32 -1.442695, %v3371_v46 }
 0x641   :  { %3501 = vpow2.f32 %v2759_v41 }
 0x642   :  { %3503 = vpow2.f32 %v2760_v42 }
 0x643   :  { %3505 = vpow2.f32 %v2761_v14 }
 0x644   :  { %3507 = vtanh.f32 %v3370_v49 }
 0x64b   :  { %v3502_v4 = vpop.eup %3501 }
 0x64c   :  { %v3504_v50 = vpop.eup %3503  ;;  %v2051_v8 = vadd.f32 1.0, %v3502_v4 }
 0x64d   :  { %v2057_v57 = vadd.f32 1.0, %v3504_v50  ;;  %v3506_v34 = vpop.eup %3505 }
 0x64e   :  { %3509 = vrcp.f32 %v2051_v8  ;;  %v3508_v61 = vpop.eup %3507  ;;  %v2064_v12 = vadd.f32 1.0, %v3506_v34 }
 0x64f   :  { %3511 = vrcp.f32 %v2057_v57 }
 0x650   :  { %3513 = vrcp.f32 %v2064_v12 }
 0x658   :  { %v3510_v62 = vpop.eup %3509 }
 0x659   :  { %v3512_v6 = vpop.eup %3511  ;;  %v2068_v47 = vmul.f32 %v3510_v62, %v3508_v61 }
 0x65a   :  { %v2067_v11 = vmul.f32 %v3512_v6, %v4097_v7  ;;  %v3514_v59 = vpop.eup %3513  ;;  %v2394_v7 = vld [vmem:[#allocation4 + $0x38] sm:$0xff] }
 0x65c   :  { %v4147_v15 = vadd.f32 %v2068_v47, %v2067_v11 }
 0x65e   :  { %3515 = vtanh.f32 %v4147_v15 }
 0x668   :  { %v3516_v24 = vpop.eup %3515 }
 0x669   :  { %v2071_v25 = vmul.f32 %v3516_v24, %v3514_v59 }
 0x66b   :  { %2073 = vst [vmem:[#allocation10 + $0x28] sm:$0xff] %v2071_v25  ;;  %2286 = vmatmul.mubr.f32.vlgmr.msra.gmra.mrb[12].mxu0 %v2071_v25  ;;  %2357 = vmatmul.mubr.f32.vlgmr.msra.gmra.mrb[12].mxu1 %v2071_v25 }
 0x66c   :  { %3279 = vmatpush1.bf16.msra.mxu0 %v3728_v9  ;;  %3283 = vmatpush1.bf16.msra.mxu1 %v3731_v13 }
 0x66d   :  { %2462 = vmatprep.mubr.f32.mxu0 %v3650_v0  ;;  %2533 = vmatprep.mubr.f32.mxu1 %v3650_v0 }
 0x66e   :  { %3285 = vmatprep.subr.bf16.mxu0 %v3735_v17  ;;  %3317 = vmatprep.subr.bf16.mxu1 %v3737_v18 }
 0x66f   :  { %2767 = vmatmul.mubr.msk.f32.vlgmr.msra.gmra.mrb[14].mxu0 %vm162_vm0, %v2394_v7  ;;  %2768 = vmatmul.mubr.msk.f32.vlgmr.msra.gmra.mrb[14].mxu1 %vm162_vm0, %v2394_v7 }
 0x670   :  { %3287 = vmatpush1.bf16.msra.mxu0 %v3740_v22  ;;  %3319 = vmatpush1.bf16.msra.mxu1 %v3744_v26 }
 0x671   :  { %3289 = vmatprep.subr.bf16.mxu0 %v3747_v30  ;;  %3321 = vmatprep.subr.bf16.mxu1 %v3749_v31 }
 0x672   :  { %2604 = vmatprep.mubr.f32.mxu0 %v3650_v0  ;;  %2675 = vmatprep.mubr.f32.mxu1 %v3650_v0 }
 0x674   :  { %3291 = vmatpush1.bf16.msra.mxu0 %v3753_v35  ;;  %3323 = vmatpush1.bf16.msra.mxu1 %v3757_v39 }
 0x675   :  { %3293 = vmatprep.subr.bf16.mxu0 %v3759_v40  ;;  %3325 = vmatprep.subr.bf16.mxu1 %v3762_v44 }
 0x678   :  { %3295 = vmatpush1.bf16.msra.mxu0 %v3767_v51  ;;  %3327 = vmatpush1.bf16.msra.mxu1 %v3771_v53 }
 0x679   :  { %3297 = vmatprep.subr.bf16.mxu0 %v3773_v54  ;;  %3329 = vmatprep.subr.bf16.mxu1 %v3776_v58 }
 0x67c   :  { %3299 = vmatpush1.bf16.msra.mxu0 %v3779_v1  ;;  %3331 = vmatpush1.bf16.msra.mxu1 %v3783_v2 }
 0x67d   :  { %3301 = vmatprep.subr.bf16.mxu0 %v3785_v3  ;;  %3333 = vmatprep.subr.bf16.mxu1 %v3788_v10 }
 0x680   :  { %3303 = vmatpush1.bf16.msra.mxu0 %v3791_v19  ;;  %3335 = vmatpush1.bf16.msra.mxu1 %v3795_v20 }
 0x681   :  { %3305 = vmatprep.subr.bf16.mxu0 %v3797_v21  ;;  %3337 = vmatprep.subr.bf16.mxu1 %v3800_v27 }
 0x684   :  { %3307 = vmatpush1.bf16.msra.mxu0 %v3803_v36  ;;  %3339 = vmatpush1.bf16.msra.mxu1 %v3807_v37 }
 0x685   :  { %3309 = vmatprep.subr.bf16.mxu0 %v3809_v38  ;;  %3341 = vmatprep.subr.bf16.mxu1 %v3812_v45 }
 0x688   :  { %3311 = vmatpush1.bf16.msra.mxu0 %v3815_v52  ;;  %3343 = vmatpush1.bf16.msra.mxu1 %v3819_v55 }
 0x689   :  { %3313 = vmatprep.subr.bf16.mxu0 %v3821_v56  ;;  %3345 = vmatprep.subr.bf16.mxu1 %v3824_v60 }
 0x68c   :  { %3315 = vmatpush1.bf16.msra.mxu0 %v3827_v63  ;;  %3347 = vmatpush1.bf16.msra.mxu1 %v3831_v5 }
 0x73e   :  { %v2287_v0 = vpop.f32.mrb[12].mxu0  ;;  %v2358_v9 = vpop.f32.mrb[12].mxu1 }
 0x73f   :  { %v3372_v13 = vadd.f32 %v2287_v0, %v3885_v16  ;;  %v2289_v17 = vpop.f32.mrb[13].mxu0  ;;  %v2360_v18 = vpop.f32.mrb[13].mxu1  ;;  %v3374_v39 = vadd.f32 %v2358_v9, %v3894_v48 }
 0x740   :  { %v3373_v22 = vadd.f32 %v2289_v17, %v3887_v23  ;;  %v3375_v31 = vadd.f32 %v2360_v18, %v3891_v43 }
 0x741   :  { %v2764_v26 = vmul.f32 -1.442695, %v3372_v13 }
 0x742   :  { %v2765_v30 = vmul.f32 -1.442695, %v3373_v22  ;;  %v2766_v35 = vmul.f32 -1.442695, %v3375_v31 }
 0x743   :  { %3517 = vpow2.f32 %v2764_v26 }
 0x744   :  { %3519 = vpow2.f32 %v2765_v30 }
 0x745   :  { %3521 = vpow2.f32 %v2766_v35 }
 0x746   :  { %3523 = vtanh.f32 %v3374_v39 }
 0x74d   :  { %v3518_v40 = vpop.eup %3517 }
 0x74e   :  { %v3520_v44 = vpop.eup %3519  ;;  %v2370_v51 = vadd.f32 1.0, %v3518_v40 }
 0x74f   :  { %v2376_v53 = vadd.f32 1.0, %v3520_v44  ;;  %v3522_v54 = vpop.eup %3521 }
 0x750   :  { %3525 = vrcp.f32 %v2370_v51  ;;  %v3524_v58 = vpop.eup %3523  ;;  %v2383_v10 = vadd.f32 1.0, %v3522_v54 }
 0x751   :  { %3527 = vrcp.f32 %v2376_v53 }
 0x752   :  { %3529 = vrcp.f32 %v2383_v10 }
 0x75a   :  { %v3526_v1 = vpop.eup %3525 }
 0x75b   :  { %v3528_v2 = vpop.eup %3527  ;;  %v2387_v3 = vmul.f32 %v3526_v1, %v3524_v58 }
 0x75c   :  { %v2386_v19 = vmul.f32 %v3528_v2, %v4147_v15  ;;  %v3530_v21 = vpop.eup %3529 }
 0x75e   :  { %v2388_v20 = vadd.f32 %v2387_v3, %v2386_v19 }
 0x760   :  { %3531 = vtanh.f32 %v2388_v20 }
 0x76a   :  { %v3532_v27 = vpop.eup %3531 }
 0x76b   :  { %v2390_v36 = vmul.f32 %v3532_v27, %v3530_v21 }
 0x76d   :  { %2392 = vst [vmem:[#allocation10 + $0x30] sm:$0xff] %v2390_v36  ;;  %2605 = vmatmul.mubr.f32.vlgmr.msra.gmra.mrb[14].mxu0 %v2390_v36  ;;  %2676 = vmatmul.mubr.f32.vlgmr.msra.gmra.mrb[14].mxu1 %v2390_v36 }
 0x840   :  { %v2606_v37 = vpop.f32.mrb[14].mxu0  ;;  %v2677_v38 = vpop.f32.mrb[14].mxu1 }
 0x841   :  { %v3376_v45 = vadd.f32 %v2606_v37, %v3885_v16  ;;  %v2608_v52 = vpop.f32.mrb[15].mxu0  ;;  %v2679_v55 = vpop.f32.mrb[15].mxu1  ;;  %v3378_v29 = vadd.f32 %v2677_v38, %v3894_v48 }
 0x842   :  { %v3377_v56 = vadd.f32 %v2608_v52, %v3887_v23  ;;  %v3379_v5 = vadd.f32 %v2679_v55, %v3891_v43 }
 0x843   :  { %v2769_v60 = vmul.f32 -1.442695, %v3376_v45 }
 0x844   :  { %v2770_v63 = vmul.f32 -1.442695, %v3377_v56  ;;  %v2771_v28 = vmul.f32 -1.442695, %v3379_v5 }
 0x845   :  { %3533 = vpow2.f32 %v2769_v60 }
 0x846   :  { %3535 = vpow2.f32 %v2770_v63 }
 0x847   :  { %3537 = vpow2.f32 %v2771_v28 }
 0x848   :  { %3539 = vtanh.f32 %v3378_v29 }
 0x84f   :  { %v3534_v32 = vpop.eup %3533 }
 0x850   :  { %v3536_v33 = vpop.eup %3535  ;;  %v2689_v41 = vadd.f32 1.0, %v3534_v32 }
 0x851   :  { %v2695_v42 = vadd.f32 1.0, %v3536_v33  ;;  %v3538_v16 = vpop.eup %3537 }
 0x852   :  { %3541 = vrcp.f32 %v2689_v41  ;;  %v3540_v46 = vpop.eup %3539  ;;  %v2702_v4 = vadd.f32 1.0, %v3538_v16 }
 0x853   :  { %3543 = vrcp.f32 %v2695_v42 }
 0x854   :  { %3545 = vrcp.f32 %v2702_v4 }
 0x85c   :  { %v3542_v23 = vpop.eup %3541 }
 0x85d   :  { %v3544_v14 = vpop.eup %3543  ;;  %v2706_v49 = vmul.f32 %v3542_v23, %v3540_v46 }
 0x85e   :  { %v2705_v50 = vmul.f32 %v3544_v14, %v2388_v20  ;;  %v3546_v43 = vpop.eup %3545 }
 0x860   :  { %v2707_v8 = vadd.f32 %v2706_v49, %v2705_v50 }
 0x862   :  { %3547 = vtanh.f32 %v2707_v8 }
 0x86c   :  { %v3548_v48 = vpop.eup %3547 }
 0x86d   :  { %v2709_v57 = vmul.f32 %v3548_v48, %v3546_v43 }
 0x86f   :  { %2711 = vst [vmem:[#allocation10 + $0x38] sm:$0xff] %v2709_v57 }
 0x870   :  { %3626 = shalt.err (!%p3623_p0)
}
 0x871   :  { %s3627_s6 = scalar_lea.hbm %s4218_s4, 1024 }
 0x872   :  { %p3628_p1 = scmp.ne.s32.totalorder %s4218_s4, %s3627_s6  ;;  %p3631_p2 = scmp.lt.u32.totalorder %s3627_s6, %s4218_s4 }
 0x874   :  { %p3633_p3 = pnand %p3631_p2, %p3628_p1 }
 0x876   :  { %3636 = shalt.err (!%p3633_p3)
}
 0x877   :  { %2725 = dma.vmem_to_hbm [thread:$0]  %s2720_s26, 1024, %s4218_s4, [#allocation6], %s3647_s1, %s3647_s1, %s3648_s13  }
 0x878   :  { %3641 = dma.done.wait [#allocation6], 1024  }
 0x879   :  { %3642 = vsyncadd [#allocation6], 4294966272 }
 0x87a   :  { %2729 = vsyncpa [#allocation5], 1 }
 0x87b   :  { %2730 = vsyncpa [#allocation8], 1 }
 0x87c   :  { %2731 = vsyncpa [#allocation6], 1 }

</bundles_post_ra>
